<compile_context>
chip_gen: v5e
topology: v5e:2x2
jax: 0.10.0
libtpu: 0.0.40
codegen_flags: <defaults>
</compile_context>

<pallas_src>
import functools
import math

import jax
import jax.numpy as jnp
import numpy as np
from jax.experimental import pallas as pl
from jax.experimental.pallas import tpu as pltpu

_I32_MIN = -(2 ** 31)


def _tpu_params():
    """Generation-aware (block_budget_bytes, vmem_limit_bytes, tensorcores_per_chip)."""
    kind = ""
    try:
        kind = jax.devices()[0].device_kind.lower()
    except Exception:
        pass
    if "v7" in kind or "7x" in kind:
        # 64 MiB VMEM per TensorCore, 2 TensorCores per chip.
        return 24 * 2 ** 20, 48 * 2 ** 20, 2
    if any(v in kind for v in ("v4", "v5", "v6")):
        # 128 MiB VMEM, single TensorCore.
        return 48 * 2 ** 20, 96 * 2 ** 20, 1
    # Unknown part: conservative budget, compiler-default VMEM limit.
    return 8 * 2 ** 20, None, 1


def _kmax_kernel_generic(x_ref, o_ref, *, k, ch, n_chunks):
    """Top-k along lanes for a (TR, N) block, computed in (ch, N) chunks (any dtype).

    Per chunk: k iterations of (row max -> record column -> knock out the first
    occurrence of that max), reproducing torch.topk value semantics (duplicates kept).
    """
    n = x_ref.shape[-1]
    dtype = x_ref.dtype
    if jnp.issubdtype(dtype, jnp.floating):
        neg = jnp.array(-jnp.inf, dtype)        # -inf, NOT finfo.min (real -inf inputs stay correct)
    else:
        neg = jnp.array(jnp.iinfo(dtype).min, dtype)

    # Hoisted out of the chunk loop: JAX does not CSE broadcast_in_dim.
    iota = jax.lax.broadcasted_iota(jnp.int32, (ch, n), 1)
    col = jax.lax.broadcasted_iota(jnp.int32, (ch, k), 1)

    def chunk_body(c, carry):
        r0 = pl.multiple_of(c * ch, ch)
        x = x_ref[pl.ds(r0, ch), :]                               # (ch, n), vreg-resident
        acc = jnp.zeros((ch, k), dtype)
        for i in range(k):                                        # k is small -> unrolled
            m = jnp.max(x, axis=-1, keepdims=True)                # (ch, 1)
            acc = jnp.where(col == i, m, acc)                     # gather column i in registers
            if i + 1 < k:
                # knock out exactly one (the first) occurrence of the current max
                first = jnp.min(jnp.where(x == m, iota, n), axis=-1, keepdims=True)
                x = jnp.where(iota == first, neg, x)
        o_ref[pl.ds(r0, ch), :] = acc.astype(o_ref.dtype)         # ONE (ch, k) store per chunk
        return carry

    jax.lax.fori_loop(0, n_chunks, chunk_body, 0,
                      unroll=True if n_chunks <= 4 else 2)


def _kmax_kernel_bf16_key(x_ref, o_ref, *, k, ch, n_chunks):
    """bf16 fast path: one cross-lane reduction per top-k step via packed int32 keys.

    key = (order-preserving f32-bit-pattern of the value, high 16 bits) | (N-1-lane_index).
    bf16 -> f32 upcast leaves the low 16 bits of the f32 pattern zero, so the index fits
    in the low half and a single max over keys yields both the max value and its first
    occurrence. Keys are unique per lane, so the knockout removes exactly one slot.
    """
    n = x_ref.shape[-1]
    low = (n - 1) - jax.lax.broadcasted_iota(jnp.int32, (ch, n), 1)   # hoisted
    col = jax.lax.broadcasted_iota(jnp.int32, (ch, k), 1)             # hoisted
    knocked = jnp.int32(_I32_MIN)
    hi_mask = jnp.int32(-65536)                                       # 0xFFFF0000

    def chunk_body(c, carry):
        r0 = pl.multiple_of(c * ch, ch)
        xb = pltpu.bitcast(x_ref[pl.ds(r0, ch), :].astype(jnp.float32), jnp.int32)
        # monotone (order-preserving) signed-int32 key of the float bit pattern
        key = jnp.where(xb < 0, (~xb) + jnp.int32(_I32_MIN), xb)
        key = (key & hi_mask) | low                                    # lexicographic (value, first-lane)
        acc = jnp.zeros((ch, k), jnp.int32)
        for i in range(k):
            m = jnp.max(key, axis=-1, keepdims=True)                   # the ONLY reduction per step
            acc = jnp.where(col == i, m, acc)
            if i + 1 < k:
                key = jnp.where(key == m, knocked, key)                # knocks exactly one slot
        # decode the k keys back to bf16 values
        khi = acc & hi_mask
        kv = jnp.where(khi < 0, khi | 0xFFFF, khi)                     # restore low bits of negative keys
        bits = jnp.where(kv < 0, ~(kv - jnp.int32(_I32_MIN)), kv)      # invert the monotone map
        o_ref[pl.ds(r0, ch), :] = pltpu.bitcast(bits, jnp.float32).astype(o_ref.dtype)
        return carry

    jax.lax.fori_loop(0, n_chunks, chunk_body, 0,
                      unroll=True if n_chunks <= 4 else 2)


def kmax_pooling(x, k, axis):
    """JAX/Pallas equivalent of deepctr_torch KMaxPooling.forward (values only, sorted desc)."""
    ndim = x.ndim
    if axis < 0 or axis >= ndim:
        raise ValueError('axis must be 0~%d,now is %d' % (ndim - 1, axis))
    if k < 1 or k > x.shape[axis]:
        raise ValueError('k must be in 1 ~ %d,now k is %d' % (x.shape[axis], k))

    # ---- glue: move the top-k axis last, flatten leading dims into rows ----
    perm = [i for i in range(ndim) if i != axis] + [axis]
    inv_perm = list(np.argsort(perm))
    xt = jnp.transpose(x, perm)
    lead_shape = xt.shape[:-1]
    N = xt.shape[-1]
    R = int(math.prod(lead_shape)) if lead_shape else 1

    def _xla_fallback():
        out = jax.lax.top_k(xt, k)[0]
        return jnp.transpose(out.reshape(lead_shape + (k,)), inv_perm)

    supported = (jnp.issubdtype(x.dtype, jnp.floating)
                 or jnp.issubdtype(x.dtype, jnp.integer)) and jnp.dtype(x.dtype).itemsize <= 4
    # Tiny problems: lane padding to 128 would waste 128/N of both HBM BW and VPU work.
    if (not supported) or N < 32 or R < 8:
        return _xla_fallback()

    x2 = xt.reshape(R, N)
    itemsize = jnp.dtype(x.dtype).itemsize
    block_budget, vmem_limit, num_tc = _tpu_params()

    # ---- tiling: sublane packing, ILP row-groups, VMEM-budgeted row tiles ----
    packing = max(1, 4 // itemsize)                 # rows per 32-bit sublane: f32 1, bf16 2, int8 4
    base_ch = 8 * packing                           # one packed vreg of rows
    n_lane_vregs = pl.cdiv(N, 128)
    # keep the per-chunk vreg live set (~2-3 arrays) under ~48 vregs
    ilp = max(1, min(4, 16 // max(1, n_lane_vregs * packing)))
    CH = base_ch * ilp

    lane_n = n_lane_vregs * 128                     # VMEM lane footprint per input row
    out_lane = pl.cdiv(k, 128) * 128                # output buffer is lane-padded to 128
    bytes_per_row = (lane_n + out_lane) * itemsize
    TR_max = (block_budget // (2 * bytes_per_row) // CH) * CH   # x2: double-buffered in + out
    if TR_max < CH:
        # Very wide N: one chunk does not fit the VMEM budget -> XLA handles it (see TODO).
        return _xla_fallback()

    TR = min(TR_max, pl.cdiv(R, CH) * CH)
    grid = pl.cdiv(R, TR)
    # Only on multi-TensorCore parts (v7x) is it worth splitting / balancing the grid;
    # on 1-TC chips the grid is a serial loop and splitting just adds step overhead.
    if num_tc > 1 and R >= num_tc * CH and grid % num_tc != 0:
        grid = pl.cdiv(grid, num_tc) * num_tc
        TR = pl.cdiv(pl.cdiv(R, grid), CH) * CH
        grid = pl.cdiv(R, TR)

    use_key_path = x.dtype == jnp.bfloat16
    kern = _kmax_kernel_bf16_key if use_key_path else _kmax_kernel_generic
    kernel = functools.partial(kern, k=k, ch=CH, n_chunks=TR // CH)

    cp_kwargs = dict(dimension_semantics=("parallel",))
    if vmem_limit is not None:
        cp_kwargs["vmem_limit_bytes"] = vmem_limit

    # No input padding: the last row tile may be partial; Pallas masks OOB output rows on
    # writeback and garbage rows in the tail chunk have no side effects (purely per-row).
    out2 = pl.pallas_call(
        kernel,
        out_shape=jax.ShapeDtypeStruct((R, k), x.dtype),
        grid_spec=pltpu.PrefetchScalarGridSpec(
            num_scalar_prefetch=0,
            grid=(grid,),
            in_specs=[pl.BlockSpec((TR, N), lambda i: (i, 0))],
            out_specs=pl.BlockSpec((TR, k), lambda i: (i, 0)),
        ),
        compiler_params=pltpu.CompilerParams(**cp_kwargs),
    )(x2)

    out = out2.reshape(lead_shape + (k,))
    return jnp.transpose(out, inv_perm)


def _reference(x, k, axis):
    x_moved = jnp.moveaxis(x, axis, -1)
    ref = jax.lax.top_k(x_moved, k)[0]
    return jnp.moveaxis(ref, -1, axis)


if __name__ == "__main__":
    key = jax.random.PRNGKey(0)
    k1, k2, k3 = jax.random.split(key, 3)

    # Test 1: f32, generic knockout path: (batch, channels, seq, emb), top-k along seq.
    B, C, S, E = 2, 4, 64, 16
    kk, ax = 3, 2
    x = jax.random.normal(k1, (B, C, S, E), dtype=jnp.float32)
    out = jax.block_until_ready(kmax_pooling(x, k=kk, axis=ax))
    ref = _reference(x, kk, ax)
    assert out.shape == (B, C, kk, E), out.shape
    assert out.dtype == x.dtype
    np.testing.assert_allclose(np.asarray(out), np.asarray(ref), rtol=0, atol=0)

    # Test 2: bf16, packed-key fast path (one reduction per top-k step), axis=1.
    x2 = jax.random.normal(k2, (3, 50, 7), dtype=jnp.bfloat16)
    out2 = jax.block_until_ready(kmax_pooling(x2, k=5, axis=1))
    ref2 = _reference(x2, 5, 1)
    assert out2.shape == (3, 5, 7), out2.shape
    assert out2.dtype == x2.dtype
    np.testing.assert_allclose(np.asarray(out2, dtype=np.float32),
                               np.asarray(ref2, dtype=np.float32), rtol=0, atol=0)

    # Test 3: small-N shape routes to the lax.top_k fallback (lane padding would waste 8x).
    x3 = jax.random.normal(k3, (2, 4, 16, 8), dtype=jnp.float32)
    out3 = jax.block_until_ready(kmax_pooling(x3, k=3, axis=2))
    ref3 = _reference(x3, 3, 2)
    assert out3.shape == (2, 4, 3, 8)
    np.testing.assert_allclose(np.asarray(out3), np.asarray(ref3), rtol=0, atol=0)

    print("KERNEL_OK")
</pallas_src>

<mosaic_0001>
module attributes {stable_mosaic.version = 11 : i64} {
  func.func @_kmax_kernel_generic(%arg0: i32, %arg1: memref<128x64xf32, #tpu.memory_space<vmem>>, %arg2: memref<128x3xf32, #tpu.memory_space<vmem>>) attributes {dimension_semantics = [#tpu.dimension_semantics<parallel>], iteration_bounds = array<i64: 1>, scalar_prefetch = 0 : i64, scratch_operands = 0 : i64, tpu.core_type = #tpu.core_type<tc>, window_params = [{transform_indices = @transform_0, window_bounds = array<i64: 128, 64>}, {transform_indices = @transform_1, window_bounds = array<i64: 128, 3>}]} {
    %0 = tpu.iota {dimensions = array<i32: 1>} : vector<32x64xi32>
    %1 = tpu.iota {dimensions = array<i32: 1>} : vector<32x3xi32>
    %cst = arith.constant 0xFF800000 : f32
    %c0_i32 = arith.constant 0 : i32
    %c32_i32 = arith.constant 32 : i32
    %2 = arith.muli %c0_i32, %c32_i32 : i32
    %3 = tpu.assume_multiple %2, 32 : i32
    %4 = arith.index_cast %3 : i32 to index
    %c0 = arith.constant 0 : index
    %5 = vector.load %arg1[%4, %c0] : memref<128x64xf32, #tpu.memory_space<vmem>>, vector<32x64xf32>
    %cst_0 = arith.constant 0.000000e+00 : f32
    %6 = vector.broadcast %cst_0 : f32 to vector<32x3xf32>
    %cst_1 = arith.constant dense<0xFF800000> : vector<32xf32>
    %7 = vector.multi_reduction <maximumf>, %5, %cst_1 [1] : vector<32x64xf32> to vector<32xf32>
    %8 = vector.shape_cast %7 : vector<32xf32> to vector<32x1xf32>
    %c0_i32_2 = arith.constant 0 : i32
    %9 = vector.broadcast %c0_i32_2 : i32 to vector<32x3xi32>
    %10 = arith.cmpi eq, %1, %9 : vector<32x3xi32>
    %11 = vector.shape_cast %8 : vector<32x1xf32> to vector<32x1xf32>
    %12 = vector.broadcast %11 : vector<32x1xf32> to vector<32x3xf32>
    %13 = arith.select %10, %12, %6 : vector<32x3xi1>, vector<32x3xf32>
    %14 = vector.broadcast %8 : vector<32x1xf32> to vector<32x64xf32>
    %15 = arith.cmpf oeq, %5, %14 : vector<32x64xf32>
    %c64_i32 = arith.constant 64 : i32
    %16 = vector.broadcast %c64_i32 : i32 to vector<32x64xi32>
    %17 = arith.select %15, %0, %16 : vector<32x64xi1>, vector<32x64xi32>
    %cst_3 = arith.constant dense<2147483647> : vector<32xi32>
    %18 = vector.multi_reduction <minsi>, %17, %cst_3 [1] : vector<32x64xi32> to vector<32xi32>
    %19 = vector.shape_cast %18 : vector<32xi32> to vector<32x1xi32>
    %20 = vector.broadcast %19 : vector<32x1xi32> to vector<32x64xi32>
    %21 = arith.cmpi eq, %0, %20 : vector<32x64xi32>
    %22 = vector.broadcast %cst : f32 to vector<32x64xf32>
    %23 = arith.select %21, %22, %5 : vector<32x64xi1>, vector<32x64xf32>
    %cst_4 = arith.constant dense<0xFF800000> : vector<32xf32>
    %24 = vector.multi_reduction <maximumf>, %23, %cst_4 [1] : vector<32x64xf32> to vector<32xf32>
    %25 = vector.shape_cast %24 : vector<32xf32> to vector<32x1xf32>
    %c1_i32 = arith.constant 1 : i32
    %26 = vector.broadcast %c1_i32 : i32 to vector<32x3xi32>
    %27 = arith.cmpi eq, %1, %26 : vector<32x3xi32>
    %28 = vector.shape_cast %25 : vector<32x1xf32> to vector<32x1xf32>
    %29 = vector.broadcast %28 : vector<32x1xf32> to vector<32x3xf32>
    %30 = arith.select %27, %29, %13 : vector<32x3xi1>, vector<32x3xf32>
    %31 = vector.broadcast %25 : vector<32x1xf32> to vector<32x64xf32>
    %32 = arith.cmpf oeq, %23, %31 : vector<32x64xf32>
    %c64_i32_5 = arith.constant 64 : i32
    %33 = vector.broadcast %c64_i32_5 : i32 to vector<32x64xi32>
    %34 = arith.select %32, %0, %33 : vector<32x64xi1>, vector<32x64xi32>
    %cst_6 = arith.constant dense<2147483647> : vector<32xi32>
    %35 = vector.multi_reduction <minsi>, %34, %cst_6 [1] : vector<32x64xi32> to vector<32xi32>
    %36 = vector.shape_cast %35 : vector<32xi32> to vector<32x1xi32>
    %37 = vector.broadcast %36 : vector<32x1xi32> to vector<32x64xi32>
    %38 = arith.cmpi eq, %0, %37 : vector<32x64xi32>
    %39 = vector.broadcast %cst : f32 to vector<32x64xf32>
    %40 = arith.select %38, %39, %23 : vector<32x64xi1>, vector<32x64xf32>
    %cst_7 = arith.constant dense<0xFF800000> : vector<32xf32>
    %41 = vector.multi_reduction <maximumf>, %40, %cst_7 [1] : vector<32x64xf32> to vector<32xf32>
    %42 = vector.shape_cast %41 : vector<32xf32> to vector<32x1xf32>
    %c2_i32 = arith.constant 2 : i32
    %43 = vector.broadcast %c2_i32 : i32 to vector<32x3xi32>
    %44 = arith.cmpi eq, %1, %43 : vector<32x3xi32>
    %45 = vector.shape_cast %42 : vector<32x1xf32> to vector<32x1xf32>
    %46 = vector.broadcast %45 : vector<32x1xf32> to vector<32x3xf32>
    %47 = arith.select %44, %46, %30 : vector<32x3xi1>, vector<32x3xf32>
    %48 = arith.index_cast %3 : i32 to index
    %c0_8 = arith.constant 0 : index
    %49 = vector.load %arg2[%48, %c0_8] : memref<128x3xf32, #tpu.memory_space<vmem>>, vector<32x3xf32>
    tpu.vector_store %arg2[%48, %c0_8], %47 {strides = array<i32>} : memref<128x3xf32, #tpu.memory_space<vmem>>, vector<32x3xf32>,
    %c1_i32_9 = arith.constant 1 : i32
    %c32_i32_10 = arith.constant 32 : i32
    %50 = arith.muli %c1_i32_9, %c32_i32_10 : i32
    %51 = tpu.assume_multiple %50, 32 : i32
    %52 = arith.index_cast %51 : i32 to index
    %c0_11 = arith.constant 0 : index
    %53 = vector.load %arg1[%52, %c0_11] : memref<128x64xf32, #tpu.memory_space<vmem>>, vector<32x64xf32>
    %cst_12 = arith.constant 0.000000e+00 : f32
    %54 = vector.broadcast %cst_12 : f32 to vector<32x3xf32>
    %cst_13 = arith.constant dense<0xFF800000> : vector<32xf32>
    %55 = vector.multi_reduction <maximumf>, %53, %cst_13 [1] : vector<32x64xf32> to vector<32xf32>
    %56 = vector.shape_cast %55 : vector<32xf32> to vector<32x1xf32>
    %c0_i32_14 = arith.constant 0 : i32
    %57 = vector.broadcast %c0_i32_14 : i32 to vector<32x3xi32>
    %58 = arith.cmpi eq, %1, %57 : vector<32x3xi32>
    %59 = vector.shape_cast %56 : vector<32x1xf32> to vector<32x1xf32>
    %60 = vector.broadcast %59 : vector<32x1xf32> to vector<32x3xf32>
    %61 = arith.select %58, %60, %54 : vector<32x3xi1>, vector<32x3xf32>
    %62 = vector.broadcast %56 : vector<32x1xf32> to vector<32x64xf32>
    %63 = arith.cmpf oeq, %53, %62 : vector<32x64xf32>
    %c64_i32_15 = arith.constant 64 : i32
    %64 = vector.broadcast %c64_i32_15 : i32 to vector<32x64xi32>
    %65 = arith.select %63, %0, %64 : vector<32x64xi1>, vector<32x64xi32>
    %cst_16 = arith.constant dense<2147483647> : vector<32xi32>
    %66 = vector.multi_reduction <minsi>, %65, %cst_16 [1] : vector<32x64xi32> to vector<32xi32>
    %67 = vector.shape_cast %66 : vector<32xi32> to vector<32x1xi32>
    %68 = vector.broadcast %67 : vector<32x1xi32> to vector<32x64xi32>
    %69 = arith.cmpi eq, %0, %68 : vector<32x64xi32>
    %70 = vector.broadcast %cst : f32 to vector<32x64xf32>
    %71 = arith.select %69, %70, %53 : vector<32x64xi1>, vector<32x64xf32>
    %cst_17 = arith.constant dense<0xFF800000> : vector<32xf32>
    %72 = vector.multi_reduction <maximumf>, %71, %cst_17 [1] : vector<32x64xf32> to vector<32xf32>
    %73 = vector.shape_cast %72 : vector<32xf32> to vector<32x1xf32>
    %c1_i32_18 = arith.constant 1 : i32
    %74 = vector.broadcast %c1_i32_18 : i32 to vector<32x3xi32>
    %75 = arith.cmpi eq, %1, %74 : vector<32x3xi32>
    %76 = vector.shape_cast %73 : vector<32x1xf32> to vector<32x1xf32>
    %77 = vector.broadcast %76 : vector<32x1xf32> to vector<32x3xf32>
    %78 = arith.select %75, %77, %61 : vector<32x3xi1>, vector<32x3xf32>
    %79 = vector.broadcast %73 : vector<32x1xf32> to vector<32x64xf32>
    %80 = arith.cmpf oeq, %71, %79 : vector<32x64xf32>
    %c64_i32_19 = arith.constant 64 : i32
    %81 = vector.broadcast %c64_i32_19 : i32 to vector<32x64xi32>
    %82 = arith.select %80, %0, %81 : vector<32x64xi1>, vector<32x64xi32>
    %cst_20 = arith.constant dense<2147483647> : vector<32xi32>
    %83 = vector.multi_reduction <minsi>, %82, %cst_20 [1] : vector<32x64xi32> to vector<32xi32>
    %84 = vector.shape_cast %83 : vector<32xi32> to vector<32x1xi32>
    %85 = vector.broadcast %84 : vector<32x1xi32> to vector<32x64xi32>
    %86 = arith.cmpi eq, %0, %85 : vector<32x64xi32>
    %87 = vector.broadcast %cst : f32 to vector<32x64xf32>
    %88 = arith.select %86, %87, %71 : vector<32x64xi1>, vector<32x64xf32>
    %cst_21 = arith.constant dense<0xFF800000> : vector<32xf32>
    %89 = vector.multi_reduction <maximumf>, %88, %cst_21 [1] : vector<32x64xf32> to vector<32xf32>
    %90 = vector.shape_cast %89 : vector<32xf32> to vector<32x1xf32>
    %c2_i32_22 = arith.constant 2 : i32
    %91 = vector.broadcast %c2_i32_22 : i32 to vector<32x3xi32>
    %92 = arith.cmpi eq, %1, %91 : vector<32x3xi32>
    %93 = vector.shape_cast %90 : vector<32x1xf32> to vector<32x1xf32>
    %94 = vector.broadcast %93 : vector<32x1xf32> to vector<32x3xf32>
    %95 = arith.select %92, %94, %78 : vector<32x3xi1>, vector<32x3xf32>
    %96 = arith.index_cast %51 : i32 to index
    %c0_23 = arith.constant 0 : index
    %97 = vector.load %arg2[%96, %c0_23] : memref<128x3xf32, #tpu.memory_space<vmem>>, vector<32x3xf32>
    tpu.vector_store %arg2[%96, %c0_23], %95 {strides = array<i32>} : memref<128x3xf32, #tpu.memory_space<vmem>>, vector<32x3xf32>,
    %c2_i32_24 = arith.constant 2 : i32
    %c32_i32_25 = arith.constant 32 : i32
    %98 = arith.muli %c2_i32_24, %c32_i32_25 : i32
    %99 = tpu.assume_multiple %98, 32 : i32
    %100 = arith.index_cast %99 : i32 to index
    %c0_26 = arith.constant 0 : index
    %101 = vector.load %arg1[%100, %c0_26] : memref<128x64xf32, #tpu.memory_space<vmem>>, vector<32x64xf32>
    %cst_27 = arith.constant 0.000000e+00 : f32
    %102 = vector.broadcast %cst_27 : f32 to vector<32x3xf32>
    %cst_28 = arith.constant dense<0xFF800000> : vector<32xf32>
    %103 = vector.multi_reduction <maximumf>, %101, %cst_28 [1] : vector<32x64xf32> to vector<32xf32>
    %104 = vector.shape_cast %103 : vector<32xf32> to vector<32x1xf32>
    %c0_i32_29 = arith.constant 0 : i32
    %105 = vector.broadcast %c0_i32_29 : i32 to vector<32x3xi32>
    %106 = arith.cmpi eq, %1, %105 : vector<32x3xi32>
    %107 = vector.shape_cast %104 : vector<32x1xf32> to vector<32x1xf32>
    %108 = vector.broadcast %107 : vector<32x1xf32> to vector<32x3xf32>
    %109 = arith.select %106, %108, %102 : vector<32x3xi1>, vector<32x3xf32>
    %110 = vector.broadcast %104 : vector<32x1xf32> to vector<32x64xf32>
    %111 = arith.cmpf oeq, %101, %110 : vector<32x64xf32>
    %c64_i32_30 = arith.constant 64 : i32
    %112 = vector.broadcast %c64_i32_30 : i32 to vector<32x64xi32>
    %113 = arith.select %111, %0, %112 : vector<32x64xi1>, vector<32x64xi32>
    %cst_31 = arith.constant dense<2147483647> : vector<32xi32>
    %114 = vector.multi_reduction <minsi>, %113, %cst_31 [1] : vector<32x64xi32> to vector<32xi32>
    %115 = vector.shape_cast %114 : vector<32xi32> to vector<32x1xi32>
    %116 = vector.broadcast %115 : vector<32x1xi32> to vector<32x64xi32>
    %117 = arith.cmpi eq, %0, %116 : vector<32x64xi32>
    %118 = vector.broadcast %cst : f32 to vector<32x64xf32>
    %119 = arith.select %117, %118, %101 : vector<32x64xi1>, vector<32x64xf32>
    %cst_32 = arith.constant dense<0xFF800000> : vector<32xf32>
    %120 = vector.multi_reduction <maximumf>, %119, %cst_32 [1] : vector<32x64xf32> to vector<32xf32>
    %121 = vector.shape_cast %120 : vector<32xf32> to vector<32x1xf32>
    %c1_i32_33 = arith.constant 1 : i32
    %122 = vector.broadcast %c1_i32_33 : i32 to vector<32x3xi32>
    %123 = arith.cmpi eq, %1, %122 : vector<32x3xi32>
    %124 = vector.shape_cast %121 : vector<32x1xf32> to vector<32x1xf32>
    %125 = vector.broadcast %124 : vector<32x1xf32> to vector<32x3xf32>
    %126 = arith.select %123, %125, %109 : vector<32x3xi1>, vector<32x3xf32>
    %127 = vector.broadcast %121 : vector<32x1xf32> to vector<32x64xf32>
    %128 = arith.cmpf oeq, %119, %127 : vector<32x64xf32>
    %c64_i32_34 = arith.constant 64 : i32
    %129 = vector.broadcast %c64_i32_34 : i32 to vector<32x64xi32>
    %130 = arith.select %128, %0, %129 : vector<32x64xi1>, vector<32x64xi32>
    %cst_35 = arith.constant dense<2147483647> : vector<32xi32>
    %131 = vector.multi_reduction <minsi>, %130, %cst_35 [1] : vector<32x64xi32> to vector<32xi32>
    %132 = vector.shape_cast %131 : vector<32xi32> to vector<32x1xi32>
    %133 = vector.broadcast %132 : vector<32x1xi32> to vector<32x64xi32>
    %134 = arith.cmpi eq, %0, %133 : vector<32x64xi32>
    %135 = vector.broadcast %cst : f32 to vector<32x64xf32>
    %136 = arith.select %134, %135, %119 : vector<32x64xi1>, vector<32x64xf32>
    %cst_36 = arith.constant dense<0xFF800000> : vector<32xf32>
    %137 = vector.multi_reduction <maximumf>, %136, %cst_36 [1] : vector<32x64xf32> to vector<32xf32>
    %138 = vector.shape_cast %137 : vector<32xf32> to vector<32x1xf32>
    %c2_i32_37 = arith.constant 2 : i32
    %139 = vector.broadcast %c2_i32_37 : i32 to vector<32x3xi32>
    %140 = arith.cmpi eq, %1, %139 : vector<32x3xi32>
    %141 = vector.shape_cast %138 : vector<32x1xf32> to vector<32x1xf32>
    %142 = vector.broadcast %141 : vector<32x1xf32> to vector<32x3xf32>
    %143 = arith.select %140, %142, %126 : vector<32x3xi1>, vector<32x3xf32>
    %144 = arith.index_cast %99 : i32 to index
    %c0_38 = arith.constant 0 : index
    %145 = vector.load %arg2[%144, %c0_38] : memref<128x3xf32, #tpu.memory_space<vmem>>, vector<32x3xf32>
    tpu.vector_store %arg2[%144, %c0_38], %143 {strides = array<i32>} : memref<128x3xf32, #tpu.memory_space<vmem>>, vector<32x3xf32>,
    %c3_i32 = arith.constant 3 : i32
    %c32_i32_39 = arith.constant 32 : i32
    %146 = arith.muli %c3_i32, %c32_i32_39 : i32
    %147 = tpu.assume_multiple %146, 32 : i32
    %148 = arith.index_cast %147 : i32 to index
    %c0_40 = arith.constant 0 : index
    %149 = vector.load %arg1[%148, %c0_40] : memref<128x64xf32, #tpu.memory_space<vmem>>, vector<32x64xf32>
    %cst_41 = arith.constant 0.000000e+00 : f32
    %150 = vector.broadcast %cst_41 : f32 to vector<32x3xf32>
    %cst_42 = arith.constant dense<0xFF800000> : vector<32xf32>
    %151 = vector.multi_reduction <maximumf>, %149, %cst_42 [1] : vector<32x64xf32> to vector<32xf32>
    %152 = vector.shape_cast %151 : vector<32xf32> to vector<32x1xf32>
    %c0_i32_43 = arith.constant 0 : i32
    %153 = vector.broadcast %c0_i32_43 : i32 to vector<32x3xi32>
    %154 = arith.cmpi eq, %1, %153 : vector<32x3xi32>
    %155 = vector.shape_cast %152 : vector<32x1xf32> to vector<32x1xf32>
    %156 = vector.broadcast %155 : vector<32x1xf32> to vector<32x3xf32>
    %157 = arith.select %154, %156, %150 : vector<32x3xi1>, vector<32x3xf32>
    %158 = vector.broadcast %152 : vector<32x1xf32> to vector<32x64xf32>
    %159 = arith.cmpf oeq, %149, %158 : vector<32x64xf32>
    %c64_i32_44 = arith.constant 64 : i32
    %160 = vector.broadcast %c64_i32_44 : i32 to vector<32x64xi32>
    %161 = arith.select %159, %0, %160 : vector<32x64xi1>, vector<32x64xi32>
    %cst_45 = arith.constant dense<2147483647> : vector<32xi32>
    %162 = vector.multi_reduction <minsi>, %161, %cst_45 [1] : vector<32x64xi32> to vector<32xi32>
    %163 = vector.shape_cast %162 : vector<32xi32> to vector<32x1xi32>
    %164 = vector.broadcast %163 : vector<32x1xi32> to vector<32x64xi32>
    %165 = arith.cmpi eq, %0, %164 : vector<32x64xi32>
    %166 = vector.broadcast %cst : f32 to vector<32x64xf32>
    %167 = arith.select %165, %166, %149 : vector<32x64xi1>, vector<32x64xf32>
    %cst_46 = arith.constant dense<0xFF800000> : vector<32xf32>
    %168 = vector.multi_reduction <maximumf>, %167, %cst_46 [1] : vector<32x64xf32> to vector<32xf32>
    %169 = vector.shape_cast %168 : vector<32xf32> to vector<32x1xf32>
    %c1_i32_47 = arith.constant 1 : i32
    %170 = vector.broadcast %c1_i32_47 : i32 to vector<32x3xi32>
    %171 = arith.cmpi eq, %1, %170 : vector<32x3xi32>
    %172 = vector.shape_cast %169 : vector<32x1xf32> to vector<32x1xf32>
    %173 = vector.broadcast %172 : vector<32x1xf32> to vector<32x3xf32>
    %174 = arith.select %171, %173, %157 : vector<32x3xi1>, vector<32x3xf32>
    %175 = vector.broadcast %169 : vector<32x1xf32> to vector<32x64xf32>
    %176 = arith.cmpf oeq, %167, %175 : vector<32x64xf32>
    %c64_i32_48 = arith.constant 64 : i32
    %177 = vector.broadcast %c64_i32_48 : i32 to vector<32x64xi32>
    %178 = arith.select %176, %0, %177 : vector<32x64xi1>, vector<32x64xi32>
    %cst_49 = arith.constant dense<2147483647> : vector<32xi32>
    %179 = vector.multi_reduction <minsi>, %178, %cst_49 [1] : vector<32x64xi32> to vector<32xi32>
    %180 = vector.shape_cast %179 : vector<32xi32> to vector<32x1xi32>
    %181 = vector.broadcast %180 : vector<32x1xi32> to vector<32x64xi32>
    %182 = arith.cmpi eq, %0, %181 : vector<32x64xi32>
    %183 = vector.broadcast %cst : f32 to vector<32x64xf32>
    %184 = arith.select %182, %183, %167 : vector<32x64xi1>, vector<32x64xf32>
    %cst_50 = arith.constant dense<0xFF800000> : vector<32xf32>
    %185 = vector.multi_reduction <maximumf>, %184, %cst_50 [1] : vector<32x64xf32> to vector<32xf32>
    %186 = vector.shape_cast %185 : vector<32xf32> to vector<32x1xf32>
    %c2_i32_51 = arith.constant 2 : i32
    %187 = vector.broadcast %c2_i32_51 : i32 to vector<32x3xi32>
    %188 = arith.cmpi eq, %1, %187 : vector<32x3xi32>
    %189 = vector.shape_cast %186 : vector<32x1xf32> to vector<32x1xf32>
    %190 = vector.broadcast %189 : vector<32x1xf32> to vector<32x3xf32>
    %191 = arith.select %188, %190, %174 : vector<32x3xi1>, vector<32x3xf32>
    %192 = arith.index_cast %147 : i32 to index
    %c0_52 = arith.constant 0 : index
    %193 = vector.load %arg2[%192, %c0_52] : memref<128x3xf32, #tpu.memory_space<vmem>>, vector<32x3xf32>
    tpu.vector_store %arg2[%192, %c0_52], %191 {strides = array<i32>} : memref<128x3xf32, #tpu.memory_space<vmem>>, vector<32x3xf32>,
    %c4_i32 = arith.constant 4 : i32
    return
  }
  func.func @transform_0(%arg0: i32) -> (i32, i32) {
    %c0_i32 = arith.constant 0 : i32
    %c0_i32_0 = arith.constant 0 : i32
    return %arg0, %c0_i32 : i32, i32
  }
  func.func @transform_1(%arg0: i32) -> (i32, i32) {
    %c0_i32 = arith.constant 0 : i32
    %c0_i32_0 = arith.constant 0 : i32
    return %arg0, %c0_i32 : i32, i32
  }
}

</mosaic_0001>

<bundles_post_ra>
// kernel: tpu_custom_call.1
= control target key start
LH: loop header
LB: loop body
LE: loop exit
PB: predicated region body
PF: predicated region fallthrough
CT: control target
= control target key end

     0   :  { %vm14_vm0 = vcmask 523264   ;;  %v8_v32 = vlaneseq  ;;  %s1907_s0 = inlined_call_operand.vmem [shape: f32[128,64], index: 0, kind: input, shape index: {}]   ;;  %s1908_s1 = inlined_call_operand.vmem [shape: f32[128,3], index: 1, kind: output, shape index: {}]  }
   0x1   :  { %v894_v0 = vld [vmem:[%s1907_s0 + $0x10] sm:$0xff]  ;;  %v899_v1 = vld [vmem:[%s1907_s0] sm:$0xff]  ;;  %v915_v6 = vld [vmem:[%s1907_s0 + $0x18] sm:$0xff] }
   0x2   :  { %v21_v2 = vsel %vm14_vm0, %v894_v0, -inf  ;;  %v15_v3 = vsel %vm14_vm0, %v899_v1, -inf  ;;  %v908_v4 = vld [vmem:[%s1907_s0 + $0x20] sm:$0xff]  ;;  %v920_v7 = vld [vmem:[%s1907_s0 + $0x8] sm:$0xff]  ;;  %v925_v8 = vld [vmem:[%s1907_s0 + $0x38] sm:$0xff]  ;;  %v24_v9 = vsel %vm14_vm0, %v915_v6, -inf }
   0x3   :  { %22 = vmax.xlane.f32.xlu1 %v21_v2  ;;  %16 = vmax.xlane.f32.xlu0 %v15_v3  ;;  %v228_v5 = vsel %vm14_vm0, %v908_v4, -inf  ;;  %v18_v10 = vsel %vm14_vm0, %v920_v7, -inf  ;;  %v237_v11 = vsel %vm14_vm0, %v925_v8, -inf  ;;  %v936_v12 = vld [vmem:[%s1907_s0 + $0x30] sm:$0xff]  ;;  %v941_v13 = vld [vmem:[%s1907_s0 + $0x28] sm:$0xff]  ;;  %v962_v19 = vld [vmem:[%s1907_s0 + $0x40] sm:$0xff] }
   0x4   :  { %229 = vmax.xlane.f32.xlu2 %v228_v5  ;;  %v946_v14 = vld [vmem:[%s1907_s0 + $0x50] sm:$0xff]  ;;  %v234_v15 = vsel %vm14_vm0, %v936_v12, -inf  ;;  %v231_v16 = vsel %vm14_vm0, %v941_v13, -inf  ;;  %v957_v18 = vld [vmem:[%s1907_s0 + $0x48] sm:$0xff]  ;;  %v438_v22 = vsel %vm14_vm0, %v962_v19, -inf  ;;  %v978_v24 = vld [vmem:[%s1907_s0 + $0x60] sm:$0xff] }
   0x5   :  { %v444_v17 = vsel %vm14_vm0, %v946_v14, -inf  ;;  %v967_v20 = vld [vmem:[%s1907_s0 + $0x68] sm:$0xff]  ;;  %v441_v21 = vsel %vm14_vm0, %v957_v18, -inf  ;;  %v983_v25 = vld [vmem:[%s1907_s0 + $0x58] sm:$0xff]  ;;  %v648_v26 = vsel %vm14_vm0, %v978_v24, -inf  ;;  %v997_v29 = vld [vmem:[%s1907_s0 + $0x70] sm:$0xff] }
   0x6   :  { %v651_v23 = vsel %vm14_vm0, %v967_v20, -inf  ;;  %v447_v27 = vsel %vm14_vm0, %v983_v25, -inf  ;;  %v992_v28 = vld [vmem:[%s1907_s0 + $0x78] sm:$0xff]  ;;  %v654_v31 = vsel %vm14_vm0, %v997_v29, -inf  ;;  %v1003_v33 = vand.u32 127, %v8_v32 }
   0x7   :  { %v657_v30 = vsel %vm14_vm0, %v992_v28, -inf }
   0xb   :  { %25 = vmax.xlane.f32.xlu1 %v24_v9  ;;  %19 = vmax.xlane.f32.xlu0 %v18_v10 }
   0xc   :  { %238 = vmax.xlane.f32.xlu2 %v237_v11 }
  0x13   :  { %235 = vmax.xlane.f32.xlu1 %v234_v15  ;;  %232 = vmax.xlane.f32.xlu0 %v231_v16 }
  0x14   :  { %445 = vmax.xlane.f32.xlu2 %v444_v17 }
  0x1b   :  { %442 = vmax.xlane.f32.xlu1 %v441_v21  ;;  %439 = vmax.xlane.f32.xlu0 %v438_v22 }
  0x1c   :  { %652 = vmax.xlane.f32.xlu2 %v651_v23 }
  0x23   :  { %649 = vmax.xlane.f32.xlu1 %v648_v26  ;;  %448 = vmax.xlane.f32.xlu0 %v447_v27 }
  0x2b   :  { %658 = vmax.xlane.f32.xlu1 %v657_v30  ;;  %655 = vmax.xlane.f32.xlu0 %v654_v31 }
  0x76   :  { %v1005_v34 = vpop.xlane.xlu1 %22  ;;  %v1007_v35 = vpop.xlane.xlu0 %16 }
  0x77   :  { %vm34_vm1 = vcmp.eq.f32.partialorder %v894_v0, %v1005_v34  ;;  %vm32_vm2 = vcmp.eq.f32.partialorder %v899_v1, %v1007_v35  ;;  %v1013_v36 = vpop.xlane.xlu2 %229 }
  0x78   :  { %1924 = vst [vmem:[#allocation2_spill] sm:$0xff] %v1013_v36  ;;  %v38_v37 = vsel %vm34_vm1, %v1003_v33, 64  ;;  %v36_v38 = vsel %vm32_vm2, %v1003_v33, 64  ;;  %vm244_vm3 = vcmp.eq.f32.partialorder %v908_v4, %v1013_v36 }
  0x79   :  { %v1018_v39 = vsel %vm14_vm0, %v36_v38, 2147483647  ;;  %v1022_v41 = vsel %vm14_vm0, %v38_v37, 2147483647  ;;  %v248_v49 = vsel %vm244_vm3, %v1003_v33, 64 }
  0x7a   :  { %v42_v40 = vshra.s32 %v1018_v39, 16  ;;  %v72_v45 = vshra.s32 %v1022_v41, 16  ;;  %v1058_v57 = vsel %vm14_vm0, %v248_v49, 2147483647 }
  0x7b   :  { %v254_v60 = vshra.s32 %v1058_v57, 16 }
  0x7c   :  { %v1024_v42 = vcvt.s32.f32 %v42_v40  ;;  %v1050_v53 = vcvt.s32.f32 %v72_v45 }
  0x7d   :  { %v1087_v11 = vcvt.s32.f32 %v254_v60 }
  0x7e   :  { %v1026_v43 = vpop.xlane.xlu1 %25  ;;  %45 = vmin.xlane.f32.xlu2 %v1024_v42  ;;  %v1029_v44 = vpop.xlane.xlu0 %19 }
  0x7f   :  { %vm35_vm4 = vcmp.eq.f32.partialorder %v915_v6, %v1026_v43  ;;  %vm33_vm5 = vcmp.eq.f32.partialorder %v920_v7, %v1029_v44  ;;  %v1038_v46 = vpop.xlane.xlu2 %238 }
  0x80   :  { %1925 = vst [vmem:[#allocation3_spill] sm:$0xff] %v1038_v46  ;;  %v39_v47 = vsel %vm35_vm4, %v1003_v33, 64  ;;  %v37_v48 = vsel %vm33_vm5, %v1003_v33, 64  ;;  %vm247_vm6 = vcmp.eq.f32.partialorder %v925_v8, %v1038_v46 }
  0x81   :  { %v1044_v50 = vsel %vm14_vm0, %v39_v47, 2147483647  ;;  %v1047_v51 = vsel %vm14_vm0, %v37_v48, 2147483647  ;;  %v251_v63 = vsel %vm247_vm6, %v1003_v33, 64 }
  0x82   :  { %v87_v52 = vshra.s32 %v1044_v50, 16  ;;  %v57_v54 = vshra.s32 %v1047_v51, 16  ;;  %v1094_v17 = vsel %vm14_vm0, %v251_v63, 2147483647  ;;  %v56_v46 = vand.u32 65535, %v1047_v51 }
  0x83   :  { %v299_v23 = vshra.s32 %v1094_v17, 16 }
  0x84   :  { %v1053_v55 = vcvt.s32.f32 %v87_v52  ;;  %v1055_v56 = vcvt.s32.f32 %v57_v54 }
  0x85   :  { %v1121_v40 = vcvt.s32.f32 %v299_v23 }
  0x86   :  { %90 = vmin.xlane.f32.xlu1 %v1053_v55  ;;  %v1061_v58 = vpop.xlane.xlu1 %235  ;;  %75 = vmin.xlane.f32.xlu2 %v1050_v53  ;;  %v1064_v59 = vpop.xlane.xlu0 %232 }
  0x87   :  { %1926 = vst [vmem:[#allocation4_spill] sm:$0xff] %v1061_v58  ;;  %vm246_vm7 = vcmp.eq.f32.partialorder %v936_v12, %v1061_v58  ;;  %60 = vmin.xlane.f32.xlu0 %v1055_v56  ;;  %vm245_vm8 = vcmp.eq.f32.partialorder %v941_v13, %v1064_v59  ;;  %v1083_v5 = vpop.xlane.xlu2 %445 }
  0x88   :  { %1927 = vst [vmem:[#allocation5_spill] sm:$0xff] %v1064_v59  ;;  %v250_v61 = vsel %vm246_vm7, %v1003_v33, 64  ;;  %v249_v62 = vsel %vm245_vm8, %v1003_v33, 64  ;;  %vm456_vm9 = vcmp.eq.f32.partialorder %v946_v14, %v1083_v5 }
  0x89   :  { %v1078_v2 = vsel %vm14_vm0, %v250_v61, 2147483647  ;;  %v1081_v3 = vsel %vm14_vm0, %v249_v62, 2147483647  ;;  %1928 = vst [vmem:[#allocation6_spill] sm:$0xff] %v1083_v5  ;;  %v460_v30 = vsel %vm456_vm9, %v1003_v33, 64 }
  0x8a   :  { %v284_v9 = vshra.s32 %v1078_v2, 16  ;;  %v269_v10 = vshra.s32 %v1081_v3, 16  ;;  %v1130_v49 = vsel %vm14_vm0, %v460_v30, 2147483647  ;;  %v268_v51 = vand.u32 65535, %v1081_v3 }
  0x8b   :  { %v494_v60 = vshra.s32 %v1130_v49, 16 }
  0x8c   :  { %v1089_v15 = vcvt.s32.f32 %v284_v9  ;;  %v1091_v16 = vcvt.s32.f32 %v269_v10 }
  0x8e   :  { %v1096_v21 = vpop.xlane.xlu1 %442  ;;  %287 = vmin.xlane.f32.xlu2 %v1089_v15  ;;  %272 = vmin.xlane.f32.xlu1 %v1091_v16  ;;  %v1100_v22 = vpop.xlane.xlu0 %439 }
  0x8f   :  { %1929 = vst [vmem:[#allocation7_spill] sm:$0xff] %v1096_v21  ;;  %vm455_vm10 = vcmp.eq.f32.partialorder %v957_v18, %v1096_v21  ;;  %257 = vmin.xlane.f32.xlu0 %v1087_v11  ;;  %vm454_vm11 = vcmp.eq.f32.partialorder %v962_v19, %v1100_v22  ;;  %v1123_v45 = vpop.xlane.xlu2 %652 }
  0x90   :  { %1930 = vst [vmem:[#allocation8_spill] sm:$0xff] %v1100_v22  ;;  %v459_v26 = vsel %vm455_vm10, %v1003_v33, 64  ;;  %v458_v27 = vsel %vm454_vm11, %v1003_v33, 64  ;;  %vm665_vm12 = vcmp.eq.f32.partialorder %v967_v20, %v1123_v45 }
  0x91   :  { %v1114_v31 = vsel %vm14_vm0, %v459_v26, 2147483647  ;;  %v1117_v32 = vsel %vm14_vm0, %v458_v27, 2147483647  ;;  %1931 = vst [vmem:[#allocation9_spill] sm:$0xff] %v1123_v45  ;;  %v669_v63 = vsel %vm665_vm12, %v1003_v33, 64  ;;  %v1157_v27 = vcvt.s32.f32 %v494_v60 }
  0x92   :  { %v479_v37 = vshra.s32 %v1114_v31, 16  ;;  %v464_v38 = vshra.s32 %v1117_v32, 16 }
  0x94   :  { %v1125_v47 = vcvt.s32.f32 %v479_v37  ;;  %v1127_v48 = vcvt.s32.f32 %v464_v38  ;;  %v1164_v38 = vsel %vm14_vm0, %v669_v63, 2147483647 }
  0x95   :  { %v689_v60 = vshra.s32 %v1164_v38, 16 }
  0x96   :  { %v1132_v52 = vpop.xlane.xlu1 %649  ;;  %482 = vmin.xlane.f32.xlu2 %v1125_v47  ;;  %467 = vmin.xlane.f32.xlu1 %v1127_v48  ;;  %v1136_v54 = vpop.xlane.xlu0 %448 }
  0x97   :  { %1932 = vst [vmem:[#allocation10_spill] sm:$0xff] %v1132_v52  ;;  %vm664_vm13 = vcmp.eq.f32.partialorder %v978_v24, %v1132_v52  ;;  %302 = vmin.xlane.f32.xlu0 %v1121_v40  ;;  %vm457_vm14 = vcmp.eq.f32.partialorder %v983_v25, %v1136_v54  ;;  %v1188_v5 = vcvt.s32.f32 %v689_v60 }
  0x98   :  { %1933 = vst [vmem:[#allocation11_spill] sm:$0xff] %v1136_v54  ;;  %v668_v61 = vsel %vm664_vm13, %v1003_v33, 64  ;;  %v461_v62 = vsel %vm457_vm14, %v1003_v33, 64 }
  0x99   :  { %v1150_v9 = vsel %vm14_vm0, %v668_v61, 2147483647  ;;  %v1153_v10 = vsel %vm14_vm0, %v461_v62, 2147483647 }
  0x9a   :  { %v674_v23 = vshra.s32 %v1150_v9, 16  ;;  %v509_v26 = vshra.s32 %v1153_v10, 16 }
  0x9c   :  { %v1159_v30 = vcvt.s32.f32 %v674_v23  ;;  %v1161_v37 = vcvt.s32.f32 %v509_v26 }
  0x9e   :  { %v1166_v45 = vpop.xlane.xlu1 %658  ;;  %677 = vmin.xlane.f32.xlu2 %v1159_v30  ;;  %512 = vmin.xlane.f32.xlu1 %v1161_v37  ;;  %v1170_v61 = vpop.xlane.xlu0 %655 }
  0x9f   :  { %1934 = vst [vmem:[#allocation12_spill] sm:$0xff] %v1166_v45  ;;  %vm667_vm15 = vcmp.eq.f32.partialorder %v992_v28, %v1166_v45  ;;  %497 = vmin.xlane.f32.xlu0 %v1157_v27  ;;  %vm666_vm1 = vcmp.eq.f32.partialorder %v997_v29, %v1170_v61 }
  0xa0   :  { %1935 = vst [vmem:[#allocation13_spill] sm:$0xff] %v1170_v61  ;;  %v671_v62 = vsel %vm667_vm15, %v1003_v33, 64  ;;  %v670_v63 = vsel %vm666_vm1, %v1003_v33, 64 }
  0xa1   :  { %v1181_v23 = vsel %vm14_vm0, %v671_v62, 2147483647  ;;  %v1184_v26 = vsel %vm14_vm0, %v670_v63, 2147483647  ;;  %v41_v62 = vand.u32 65535, %v1018_v39 }
  0xa2   :  { %v719_v52 = vshra.s32 %v1181_v23, 16  ;;  %v704_v45 = vshra.s32 %v1184_v26, 16 }
  0xa3   :  { %v43_v21 = vcvt.s32.f32 %v41_v62  ;;  %v283_v62 = vand.u32 65535, %v1078_v2  ;;  %v463_v2 = vand.u32 65535, %v1117_v32 }
  0xa4   :  { %v1190_v54 = vcvt.s32.f32 %v719_v52  ;;  %v1192_v61 = vcvt.s32.f32 %v704_v45  ;;  %v86_v52 = vand.u32 65535, %v1044_v50  ;;  %v71_v45 = vand.u32 65535, %v1022_v41 }
  0xa6   :  { %722 = vmin.xlane.f32.xlu2 %v1190_v54  ;;  %707 = vmin.xlane.f32.xlu1 %v1192_v61  ;;  %v88_v36 = vcvt.s32.f32 %v86_v52  ;;  %v73_v39 = vcvt.s32.f32 %v71_v45 }
  0xa7   :  { %692 = vmin.xlane.f32.xlu0 %v1188_v5 }
  0xf1   :  { %v1198_v63 = vpop.xlane.xlu2 %45 }
  0xf2   :  { %vm47_vm2 = vcmp.eq.f32.partialorder %v1024_v42, %v1198_v63  ;;  %v58_v42 = vcvt.s32.f32 %v56_v46  ;;  %v270_v46 = vcvt.s32.f32 %v268_v51 }
  0xf3   :  { %v48_v60 = vsel %vm47_vm2, %v43_v21, inf }
  0xf4   :  { %49 = vmin.xlane.f32.xlu2 %v48_v60  ;;  %v253_v60 = vand.u32 65535, %v1058_v57 }
  0xf9   :  { %v1205_v22 = vpop.xlane.xlu1 %90  ;;  %v1207_v58 = vpop.xlane.xlu2 %75 }
  0xfa   :  { %v1209_v59 = vpop.xlane.xlu0 %60  ;;  %vm92_vm3 = vcmp.eq.f32.partialorder %v1053_v55, %v1205_v22  ;;  %vm77_vm4 = vcmp.eq.f32.partialorder %v1050_v53, %v1207_v58 }
  0xfb   :  { %v93_v50 = vsel %vm92_vm3, %v88_v36, inf  ;;  %v78_v21 = vsel %vm77_vm4, %v73_v39, inf  ;;  %vm62_vm5 = vcmp.eq.f32.partialorder %v1055_v56, %v1209_v59  ;;  %v285_v36 = vcvt.s32.f32 %v283_v62 }
  0xfc   :  { %94 = vmin.xlane.f32.xlu2 %v93_v50  ;;  %79 = vmin.xlane.f32.xlu0 %v78_v21  ;;  %v63_v41 = vsel %vm62_vm5, %v58_v42, inf  ;;  %v255_v56 = vcvt.s32.f32 %v253_v60  ;;  %v478_v39 = vand.u32 65535, %v1114_v31  ;;  %v298_v42 = vand.u32 65535, %v1094_v17 }
  0xfd   :  { %64 = vmin.xlane.f32.xlu1 %v63_v41  ;;  %v508_v31 = vand.u32 65535, %v1153_v10  ;;  %v673_v62 = vand.u32 65535, %v1150_v9  ;;  %v493_v60 = vand.u32 65535, %v1130_v49  ;;  %v703_v9 = vand.u32 65535, %v1184_v26 }
  0xfe   :  { %v480_v21 = vcvt.s32.f32 %v478_v39 }
 0x101   :  { %v1220_v55 = vpop.xlane.xlu2 %287  ;;  %v1222_v52 = vpop.xlane.xlu1 %272 }
 0x102   :  { %v1224_v53 = vpop.xlane.xlu0 %257  ;;  %vm274_vm6 = vcmp.eq.f32.partialorder %v1091_v16, %v1222_v52  ;;  %vm289_vm7 = vcmp.eq.f32.partialorder %v1089_v15, %v1220_v55  ;;  %v465_v15 = vcvt.s32.f32 %v463_v2 }
 0x103   :  { %v275_v3 = vsel %vm274_vm6, %v270_v46, inf  ;;  %v290_v45 = vsel %vm289_vm7, %v285_v36, inf  ;;  %vm259_vm8 = vcmp.eq.f32.partialorder %v1087_v11, %v1224_v53  ;;  %v300_v11 = vcvt.s32.f32 %v298_v42 }
 0x104   :  { %276 = vmin.xlane.f32.xlu0 %v275_v3  ;;  %v260_v57 = vsel %vm259_vm8, %v255_v56, inf  ;;  %v675_v36 = vcvt.s32.f32 %v673_v62 }
 0x105   :  { %291 = vmin.xlane.f32.xlu1 %v290_v45  ;;  %261 = vmin.xlane.f32.xlu2 %v260_v57  ;;  %v718_v45 = vand.u32 65535, %v1181_v23  ;;  %v688_v57 = vand.u32 65535, %v1164_v38  ;;  %v52_v23 = vcvt.f32.s32 %v1198_v63 }
 0x107   :  { %v720_v39 = vcvt.s32.f32 %v718_v45  ;;  %v264_v45 = vcvt.f32.s32 %v1224_v53 }
 0x109   :  { %v1235_v16 = vpop.xlane.xlu2 %482  ;;  %v1237_v50 = vpop.xlane.xlu1 %467 }
 0x10a   :  { %v1239_v41 = vpop.xlane.xlu0 %302  ;;  %vm469_vm9 = vcmp.eq.f32.partialorder %v1127_v48, %v1237_v50  ;;  %vm484_vm10 = vcmp.eq.f32.partialorder %v1125_v47, %v1235_v16  ;;  %v510_v47 = vcvt.s32.f32 %v508_v31 }
 0x10b   :  { %v470_v32 = vsel %vm469_vm9, %v465_v15, inf  ;;  %v485_v51 = vsel %vm484_vm10, %v480_v21, inf  ;;  %vm304_vm11 = vcmp.eq.f32.partialorder %v1121_v40, %v1239_v41  ;;  %v495_v40 = vcvt.s32.f32 %v493_v60 }
 0x10c   :  { %471 = vmin.xlane.f32.xlu0 %v470_v32  ;;  %v305_v17 = vsel %vm304_vm11, %v300_v11, inf  ;;  %v53_v11 = vshll.u32 %v52_v23, 16  ;;  %v265_v23 = vshll.u32 %v264_v45, 16 }
 0x10d   :  { %486 = vmin.xlane.f32.xlu1 %v485_v51  ;;  %306 = vmin.xlane.f32.xlu2 %v305_v17  ;;  %v67_v17 = vcvt.f32.s32 %v1209_v59  ;;  %v294_v59 = vcvt.f32.s32 %v1220_v55 }
 0x111   :  { %v1250_v48 = vpop.xlane.xlu2 %677  ;;  %v1252_v46 = vpop.xlane.xlu1 %512 }
 0x112   :  { %v1254_v56 = vpop.xlane.xlu0 %497  ;;  %vm514_vm12 = vcmp.eq.f32.partialorder %v1161_v37, %v1252_v46  ;;  %vm679_vm13 = vcmp.eq.f32.partialorder %v1159_v30, %v1250_v48  ;;  %v705_v30 = vcvt.s32.f32 %v703_v9 }
 0x113   :  { %v515_v10 = vsel %vm514_vm12, %v510_v47, inf  ;;  %v680_v3 = vsel %vm679_vm13, %v675_v36, inf  ;;  %vm499_vm14 = vcmp.eq.f32.partialorder %v1157_v27, %v1254_v56  ;;  %v690_v27 = vcvt.s32.f32 %v688_v57 }
 0x114   :  { %516 = vmin.xlane.f32.xlu0 %v515_v10  ;;  %v500_v49 = vsel %vm499_vm14, %v495_v40, inf  ;;  %v68_v10 = vshll.u32 %v67_v17, 16  ;;  %v309_v17 = vcvt.f32.s32 %v1239_v41 }
 0x115   :  { %681 = vmin.xlane.f32.xlu1 %v680_v3  ;;  %501 = vmin.xlane.f32.xlu2 %v500_v49 }
 0x119   :  { %v1265_v37 = vpop.xlane.xlu2 %722  ;;  %v1267_v2 = vpop.xlane.xlu1 %707 }
 0x11a   :  { %v1269_v42 = vpop.xlane.xlu0 %692  ;;  %vm709_vm15 = vcmp.eq.f32.partialorder %v1192_v61, %v1267_v2  ;;  %vm724_vm1 = vcmp.eq.f32.partialorder %v1190_v54, %v1265_v37  ;;  %v97_v61 = vcvt.f32.s32 %v1205_v22  ;;  %v82_v54 = vcvt.f32.s32 %v1207_v58 }
 0x11b   :  { %v710_v26 = vsel %vm709_vm15, %v705_v30, inf  ;;  %v725_v15 = vsel %vm724_vm1, %v720_v39, inf  ;;  %vm694_vm2 = vcmp.eq.f32.partialorder %v1188_v5, %v1269_v42 }
 0x11c   :  { %711 = vmin.xlane.f32.xlu0 %v710_v26  ;;  %v695_v38 = vsel %vm694_vm2, %v690_v27, inf  ;;  %v98_v60 = vshll.u32 %v97_v61, 16  ;;  %v83_v47 = vshll.u32 %v82_v54, 16  ;;  %v489_v61 = vcvt.f32.s32 %v1235_v16 }
 0x11d   :  { %726 = vmin.xlane.f32.xlu1 %v725_v15  ;;  %696 = vmin.xlane.f32.xlu2 %v695_v38  ;;  %v295_v38 = vshll.u32 %v294_v59, 16  ;;  %v474_v54 = vcvt.f32.s32 %v1237_v50  ;;  %v519_v59 = vcvt.f32.s32 %v1252_v46 }
 0x167   :  { %v50_v21 = vpop.xlane.xlu2 %49 }
 0x168   :  { %v51_v32 = vcvt.f32.s32 %v50_v21 }
 0x16a   :  { %v54_v51 = vadd.s32 %v53_v11, %v51_v32 }
 0x16c   :  { %vm100_vm3 = vcmp.eq.s32.totalorder %v1003_v33, %v54_v51 }
 0x16d   :  { %v1283_v5 = vsel %vm100_vm3, -inf, %v899_v1  ;;  %v279_v1 = vcvt.f32.s32 %v1222_v52 }
 0x16e   :  { %v108_v31 = vsel %vm14_vm0, %v1283_v5, -inf }
 0x16f   :  { %v95_v62 = vpop.xlane.xlu2 %94  ;;  %109 = vmax.xlane.f32.xlu0 %v108_v31  ;;  %v80_v63 = vpop.xlane.xlu0 %79  ;;  %v280_v27 = vshll.u32 %v279_v1, 16  ;;  %v504_v1 = vcvt.f32.s32 %v1254_v56 }
 0x170   :  { %v96_v36 = vcvt.f32.s32 %v95_v62  ;;  %v65_v40 = vpop.xlane.xlu1 %64  ;;  %v81_v22 = vcvt.f32.s32 %v80_v63 }
 0x171   :  { %v66_v58 = vcvt.f32.s32 %v65_v40  ;;  %v490_v40 = vshll.u32 %v489_v61, 16 }
 0x172   :  { %v99_v3 = vadd.s32 %v98_v60, %v96_v36  ;;  %v84_v49 = vadd.s32 %v83_v47, %v81_v22  ;;  %v475_v47 = vshll.u32 %v474_v54, 16 }
 0x173   :  { %v69_v9 = vadd.s32 %v68_v10, %v66_v58 }
 0x174   :  { %vm103_vm4 = vcmp.eq.s32.totalorder %v1003_v33, %v99_v3  ;;  %vm102_vm5 = vcmp.eq.s32.totalorder %v1003_v33, %v84_v49 }
 0x175   :  { %v1293_v57 = vsel %vm103_vm4, -inf, %v915_v6  ;;  %vm101_vm6 = vcmp.eq.s32.totalorder %v1003_v33, %v69_v9  ;;  %v1297_v30 = vsel %vm102_vm5, -inf, %v894_v0  ;;  %v684_v9 = vcvt.f32.s32 %v1250_v48 }
 0x176   :  { %v117_v39 = vsel %vm14_vm0, %v1293_v57, -inf  ;;  %v1302_v55 = vsel %vm101_vm6, -inf, %v920_v7  ;;  %v114_v52 = vsel %vm14_vm0, %v1297_v30, -inf  ;;  %vm27_vm4 = vcmp.eq.s32.totalorder %v1003_v33, 0 }
 0x177   :  { %118 = vmax.xlane.f32.xlu0 %v117_v39  ;;  %v111_v53 = vsel %vm14_vm0, %v1302_v55, -inf  ;;  %115 = vmax.xlane.f32.xlu2 %v114_v52  ;;  %v277_v6 = vpop.xlane.xlu0 %276  ;;  %vm120_vm5 = vcmp.eq.s32.totalorder %v1003_v33, 1 }
 0x178   :  { %112 = vmax.xlane.f32.xlu1 %v111_v53  ;;  %v292_v26 = vpop.xlane.xlu1 %291  ;;  %v262_v0 = vpop.xlane.xlu2 %261  ;;  %v278_v15 = vcvt.f32.s32 %v277_v6  ;;  %v520_v6 = vshll.u32 %v519_v59, 16 }
 0x179   :  { %v293_v21 = vcvt.f32.s32 %v292_v26  ;;  %v263_v11 = vcvt.f32.s32 %v262_v0  ;;  %v685_v26 = vshll.u32 %v684_v9, 16 }
 0x17a   :  { %v281_v7 = vadd.s32 %v280_v27, %v278_v15 }
 0x17b   :  { %v296_v32 = vadd.s32 %v295_v38, %v293_v21  ;;  %v266_v51 = vadd.s32 %v265_v23, %v263_v11  ;;  %v729_v11 = vcvt.f32.s32 %v1265_v37 }
 0x17c   :  { %vm313_vm7 = vcmp.eq.s32.totalorder %v1003_v33, %v281_v7  ;;  %v714_v7 = vcvt.f32.s32 %v1267_v2 }
 0x17d   :  { %vm314_vm8 = vcmp.eq.s32.totalorder %v1003_v33, %v296_v32  ;;  %vm312_vm9 = vcmp.eq.s32.totalorder %v1003_v33, %v266_v51  ;;  %v1315_v31 = vsel %vm313_vm7, -inf, %v941_v13  ;;  %v699_v32 = vcvt.f32.s32 %v1269_v42 }
 0x17e   :  { %v1318_v62 = vsel %vm314_vm8, -inf, %v936_v12  ;;  %v1321_v63 = vsel %vm312_vm9, -inf, %v908_v4  ;;  %v323_v16 = vsel %vm14_vm0, %v1315_v31, -inf  ;;  %v310_v4 = vshll.u32 %v309_v17, 16 }
 0x17f   :  { %v326_v50 = vsel %vm14_vm0, %v1318_v62, -inf  ;;  %v320_v41 = vsel %vm14_vm0, %v1321_v63, -inf  ;;  %324 = vmax.xlane.f32.xlu0 %v323_v16  ;;  %v472_v60 = vpop.xlane.xlu0 %471  ;;  %v715_v16 = vshll.u32 %v714_v7, 16 }
 0x180   :  { %327 = vmax.xlane.f32.xlu1 %v326_v50  ;;  %v487_v13 = vpop.xlane.xlu1 %486  ;;  %v307_v36 = vpop.xlane.xlu2 %306  ;;  %321 = vmax.xlane.f32.xlu2 %v320_v41  ;;  %v473_v12 = vcvt.f32.s32 %v472_v60  ;;  %v730_v41 = vshll.u32 %v729_v11, 16 }
 0x181   :  { %v488_v22 = vcvt.f32.s32 %v487_v13  ;;  %v308_v10 = vcvt.f32.s32 %v307_v36 }
 0x182   :  { %v476_v58 = vadd.s32 %v475_v47, %v473_v12 }
 0x183   :  { %v491_v3 = vadd.s32 %v490_v40, %v488_v22  ;;  %v311_v49 = vadd.s32 %v310_v4, %v308_v10 }
 0x184   :  { %vm522_vm10 = vcmp.eq.s32.totalorder %v1003_v33, %v476_v58 }
 0x185   :  { %vm523_vm11 = vcmp.eq.s32.totalorder %v1003_v33, %v491_v3  ;;  %vm315_vm12 = vcmp.eq.s32.totalorder %v1003_v33, %v311_v49  ;;  %v1336_v45 = vsel %vm522_vm10, -inf, %v962_v19 }
 0x186   :  { %v1339_v39 = vsel %vm523_vm11, -inf, %v957_v18  ;;  %v1342_v52 = vsel %vm315_vm12, -inf, %v925_v8  ;;  %v530_v48 = vsel %vm14_vm0, %v1336_v45, -inf  ;;  %v505_v8 = vshll.u32 %v504_v1, 16 }
 0x187   :  { %v533_v46 = vsel %vm14_vm0, %v1339_v39, -inf  ;;  %v329_v56 = vsel %vm14_vm0, %v1342_v52, -inf  ;;  %531 = vmax.xlane.f32.xlu0 %v530_v48  ;;  %v517_v53 = vpop.xlane.xlu0 %516  ;;  %v31_v48 = vsel %vm27_vm4, %v1026_v43, 0.0 }
 0x188   :  { %534 = vmax.xlane.f32.xlu1 %v533_v46  ;;  %v682_v19 = vpop.xlane.xlu1 %681  ;;  %v502_v27 = vpop.xlane.xlu2 %501  ;;  %330 = vmax.xlane.f32.xlu2 %v329_v56  ;;  %v518_v18 = vcvt.f32.s32 %v517_v53  ;;  %v29_v53 = vsel %vm27_vm4, %v1029_v44, 0.0 }
 0x189   :  { %v683_v0 = vcvt.f32.s32 %v682_v19  ;;  %v503_v15 = vcvt.f32.s32 %v502_v27 }
 0x18a   :  { %v521_v38 = vadd.s32 %v520_v6, %v518_v18 }
 0x18b   :  { %v686_v23 = vadd.s32 %v685_v26, %v683_v0  ;;  %v506_v21 = vadd.s32 %v505_v8, %v503_v15 }
 0x18c   :  { %vm525_vm13 = vcmp.eq.s32.totalorder %v1003_v33, %v521_v38 }
 0x18d   :  { %vm732_vm14 = vcmp.eq.s32.totalorder %v1003_v33, %v686_v23  ;;  %vm524_vm15 = vcmp.eq.s32.totalorder %v1003_v33, %v506_v21  ;;  %v1357_v51 = vsel %vm525_vm13, -inf, %v983_v25  ;;  %v1937_v21 = vld [vmem:[#allocation5_spill] sm:$0xff] }
 0x18e   :  { %v1360_v61 = vsel %vm732_vm14, -inf, %v978_v24  ;;  %v1363_v54 = vsel %vm524_vm15, -inf, %v946_v14  ;;  %v539_v37 = vsel %vm14_vm0, %v1357_v51, -inf  ;;  %v700_v14 = vshll.u32 %v699_v32, 16 }
 0x18f   :  { %v740_v2 = vsel %vm14_vm0, %v1360_v61, -inf  ;;  %v536_v42 = vsel %vm14_vm0, %v1363_v54, -inf  ;;  %540 = vmax.xlane.f32.xlu0 %v539_v37  ;;  %v712_v17 = vpop.xlane.xlu0 %711  ;;  %v241_v11 = vsel %vm27_vm4, %v1937_v21, 0.0  ;;  %v1938_v37 = vld [vmem:[#allocation2_spill] sm:$0xff] }
 0x190   :  { %741 = vmax.xlane.f32.xlu1 %v740_v2  ;;  %v727_v25 = vpop.xlane.xlu1 %726  ;;  %v697_v50 = vpop.xlane.xlu2 %696  ;;  %537 = vmax.xlane.f32.xlu2 %v536_v42  ;;  %v713_v24 = vcvt.f32.s32 %v712_v17  ;;  %v240_v2 = vsel %vm27_vm4, %v1938_v37, 0.0  ;;  %v1939_v42 = vld [vmem:[#allocation4_spill] sm:$0xff] }
 0x191   :  { %v728_v60 = vcvt.f32.s32 %v727_v25  ;;  %v698_v47 = vcvt.f32.s32 %v697_v50  ;;  %v242_v17 = vsel %vm27_vm4, %v1939_v42, 0.0 }
 0x192   :  { %v716_v13 = vadd.s32 %v715_v16, %v713_v24 }
 0x193   :  { %v731_v36 = vadd.s32 %v730_v41, %v728_v60  ;;  %v701_v12 = vadd.s32 %v700_v14, %v698_v47 }
 0x194   :  { %vm734_vm1 = vcmp.eq.s32.totalorder %v1003_v33, %v716_v13 }
 0x195   :  { %vm735_vm2 = vcmp.eq.s32.totalorder %v1003_v33, %v731_v36  ;;  %vm733_vm3 = vcmp.eq.s32.totalorder %v1003_v33, %v701_v12  ;;  %v1375_v40 = vsel %vm734_vm1, -inf, %v997_v29 }
 0x196   :  { %v1378_v4 = vsel %vm735_vm2, -inf, %v992_v28  ;;  %v1381_v22 = vsel %vm733_vm3, -inf, %v967_v20  ;;  %v746_v10 = vsel %vm14_vm0, %v1375_v40, -inf  ;;  %v28_v20 = vsel %vm27_vm4, %v1007_v35, 0.0 }
 0x197   :  { %v749_v58 = vsel %vm14_vm0, %v1378_v4, -inf  ;;  %v743_v3 = vsel %vm14_vm0, %v1381_v22, -inf  ;;  %747 = vmax.xlane.f32.xlu0 %v746_v10  ;;  %v30_v35 = vsel %vm27_vm4, %v1005_v34, 0.0 }
 0x198   :  { %750 = vmax.xlane.f32.xlu1 %v749_v58  ;;  %744 = vmax.xlane.f32.xlu2 %v743_v3 }
 0x1e2   :  { %v110_v28 = vpop.xlane.xlu0 %109 }
 0x1e3   :  { %v1396_v29 = vsel %vm120_vm5, %v110_v28, %v28_v20  ;;  %vm125_vm6 = vcmp.eq.f32.partialorder %v1283_v5, %v110_v28 }
 0x1e4   :  { %v129_v49 = vsel %vm125_vm6, %v1003_v33, 64 }
 0x1e5   :  { %v1401_v9 = vsel %vm14_vm0, %v129_v49, 2147483647  ;;  %v1942_v49 = vld [vmem:[#allocation8_spill] sm:$0xff] }
 0x1e6   :  { %v135_v59 = vshra.s32 %v1401_v9, 16 }
 0x1e8   :  { %v1404_v1 = vcvt.s32.f32 %v135_v59  ;;  %v450_v59 = vsel %vm27_vm4, %v1942_v49, 0.0  ;;  %v1949_v49 = vld [vmem:[#allocation6_spill] sm:$0xff] }
 0x1ea   :  { %v116_v46 = vpop.xlane.xlu2 %115  ;;  %138 = vmin.xlane.f32.xlu1 %v1404_v1  ;;  %v119_v56 = vpop.xlane.xlu0 %118 }
 0x1eb   :  { %v113_v6 = vpop.xlane.xlu1 %112  ;;  %v1418_v19 = vsel %vm120_vm5, %v116_v46, %v30_v35  ;;  %vm127_vm7 = vcmp.eq.f32.partialorder %v1297_v30, %v116_v46  ;;  %v1423_v34 = vsel %vm120_vm5, %v119_v56, %v31_v48  ;;  %vm128_vm9 = vcmp.eq.f32.partialorder %v1293_v57, %v119_v56  ;;  %v1943_v46 = vld [vmem:[#allocation3_spill] sm:$0xff] }
 0x1ec   :  { %1936 = vst [vmem:[#allocation14_spill] sm:$0xff] %v1423_v34  ;;  %v1427_v43 = vsel %vm120_vm5, %v113_v6, %v29_v53  ;;  %vm126_vm8 = vcmp.eq.f32.partialorder %v1302_v55, %v113_v6  ;;  %v131_v27 = vsel %vm127_vm7, %v1003_v33, 64  ;;  %v132_v0 = vsel %vm128_vm9, %v1003_v33, 64  ;;  %v1944_v53 = vld [vmem:[#allocation7_spill] sm:$0xff] }
 0x1ed   :  { %v130_v44 = vsel %vm126_vm8, %v1003_v33, 64  ;;  %v1434_v18 = vsel %vm14_vm0, %v131_v27, 2147483647  ;;  %v1451_v32 = vsel %vm14_vm0, %v132_v0, 2147483647  ;;  %v243_v56 = vsel %vm27_vm4, %v1943_v46, 0.0 }
 0x1ee   :  { %v165_v26 = vshra.s32 %v1434_v18, 16  ;;  %v1438_v8 = vsel %vm14_vm0, %v130_v44, 2147483647  ;;  %v180_v47 = vshra.s32 %v1451_v32, 16  ;;  %v451_v6 = vsel %vm27_vm4, %v1944_v53, 0.0 }
 0x1ef   :  { %v150_v15 = vshra.s32 %v1438_v8, 16 }
 0x1f0   :  { %v1442_v38 = vcvt.s32.f32 %v165_v26  ;;  %v1489_v20 = vcvt.s32.f32 %v180_v47  ;;  %v1948_v47 = vld [vmem:[#allocation11_spill] sm:$0xff] }
 0x1f1   :  { %v1444_v23 = vcvt.s32.f32 %v150_v15 }
 0x1f2   :  { %168 = vmin.xlane.f32.xlu2 %v1442_v38  ;;  %v325_v7 = vpop.xlane.xlu0 %324 }
 0x1f3   :  { %v328_v16 = vpop.xlane.xlu1 %327  ;;  %v322_v25 = vpop.xlane.xlu2 %321  ;;  %153 = vmin.xlane.f32.xlu0 %v1444_v23  ;;  %v1462_v50 = vsel %vm120_vm5, %v325_v7, %v241_v11  ;;  %vm337_vm10 = vcmp.eq.f32.partialorder %v1315_v31, %v325_v7 }
 0x1f4   :  { %1940 = vst [vmem:[#allocation5_spill] sm:$0xff] %v1462_v50  ;;  %v1467_v24 = vsel %vm120_vm5, %v328_v16, %v242_v17  ;;  %vm338_vm11 = vcmp.eq.f32.partialorder %v1318_v62, %v328_v16  ;;  %v1472_v41 = vsel %vm120_vm5, %v322_v25, %v240_v2  ;;  %vm336_vm12 = vcmp.eq.f32.partialorder %v1321_v63, %v322_v25 }
 0x1f5   :  { %1941 = vst [vmem:[#allocation2_spill] sm:$0xff] %v1467_v24  ;;  %v340_v14 = vsel %vm336_vm12, %v1003_v33, 64  ;;  %v341_v60 = vsel %vm337_vm10, %v1003_v33, 64  ;;  %v342_v12 = vsel %vm338_vm11, %v1003_v33, 64 }
 0x1f6   :  { %v1479_v13 = vsel %vm14_vm0, %v340_v14, 2147483647  ;;  %v1482_v36 = vsel %vm14_vm0, %v341_v60, 2147483647  ;;  %v1497_v48 = vsel %vm14_vm0, %v342_v12, 2147483647 }
 0x1f7   :  { %v346_v10 = vshra.s32 %v1479_v13, 16  ;;  %v361_v58 = vshra.s32 %v1482_v36, 16  ;;  %v376_v7 = vshra.s32 %v1497_v48, 16  ;;  %v453_v12 = vsel %vm27_vm4, %v1948_v47, 0.0 }
 0x1f9   :  { %v1487_v3 = vcvt.s32.f32 %v346_v10  ;;  %v1491_v28 = vcvt.s32.f32 %v361_v58  ;;  %v1537_v14 = vcvt.s32.f32 %v376_v7 }
 0x1fa   :  { %v532_v35 = vpop.xlane.xlu0 %531 }
 0x1fb   :  { %v535_v27 = vpop.xlane.xlu1 %534  ;;  %v331_v44 = vpop.xlane.xlu2 %330  ;;  %349 = vmin.xlane.f32.xlu1 %v1487_v3  ;;  %183 = vmin.xlane.f32.xlu0 %v1489_v20  ;;  %v1509_v26 = vsel %vm120_vm5, %v532_v35, %v450_v59  ;;  %vm546_vm13 = vcmp.eq.f32.partialorder %v1336_v45, %v532_v35  ;;  %v452_v59 = vsel %vm27_vm4, %v1949_v49, 0.0  ;;  %v1950_v35 = vld [vmem:[#allocation10_spill] sm:$0xff] }
 0x1fc   :  { %1945 = vst [vmem:[#allocation4_spill] sm:$0xff] %v1509_v26  ;;  %v1514_v0 = vsel %vm120_vm5, %v535_v27, %v451_v6  ;;  %vm547_vm14 = vcmp.eq.f32.partialorder %v1339_v39, %v535_v27  ;;  %v1519_v15 = vsel %vm120_vm5, %v331_v44, %v243_v56  ;;  %vm339_vm15 = vcmp.eq.f32.partialorder %v1342_v52, %v331_v44 }
 0x1fd   :  { %1946 = vst [vmem:[#allocation8_spill] sm:$0xff] %v1514_v0  ;;  %364 = vmin.xlane.f32.xlu2 %v1491_v28  ;;  %v343_v21 = vsel %vm339_vm15, %v1003_v33, 64  ;;  %v550_v11 = vsel %vm546_vm13, %v1003_v33, 64  ;;  %v551_v42 = vsel %vm547_vm14, %v1003_v33, 64  ;;  %v660_v46 = vsel %vm27_vm4, %v1950_v35, 0.0 }
 0x1fe   :  { %1947 = vst [vmem:[#allocation3_spill] sm:$0xff] %v1519_v15  ;;  %v1527_v37 = vsel %vm14_vm0, %v343_v21, 2147483647  ;;  %v1530_v2 = vsel %vm14_vm0, %v550_v11, 2147483647 }
 0x1ff   :  { %v391_v17 = vshra.s32 %v1527_v37, 16  ;;  %v556_v16 = vshra.s32 %v1530_v2, 16  ;;  %v1545_v58 = vsel %vm14_vm0, %v551_v42, 2147483647 }
 0x200   :  { %v571_v7 = vshra.s32 %v1545_v58, 16 }
 0x201   :  { %v1535_v25 = vcvt.s32.f32 %v391_v17  ;;  %v1539_v60 = vcvt.s32.f32 %v556_v16 }
 0x202   :  { %v541_v10 = vpop.xlane.xlu0 %540  ;;  %v1585_v49 = vcvt.s32.f32 %v571_v7 }
 0x203   :  { %v742_v56 = vpop.xlane.xlu1 %741  ;;  %v538_v53 = vpop.xlane.xlu2 %537  ;;  %394 = vmin.xlane.f32.xlu1 %v1535_v25  ;;  %379 = vmin.xlane.f32.xlu0 %v1537_v14  ;;  %v1557_v6 = vsel %vm120_vm5, %v541_v10, %v453_v12  ;;  %vm549_vm1 = vcmp.eq.f32.partialorder %v1357_v51, %v541_v10 }
 0x204   :  { %1951 = vst [vmem:[#allocation7_spill] sm:$0xff] %v1557_v6  ;;  %v1562_v27 = vsel %vm120_vm5, %v742_v56, %v660_v46  ;;  %vm756_vm2 = vcmp.eq.f32.partialorder %v1360_v61, %v742_v56  ;;  %v1567_v44 = vsel %vm120_vm5, %v538_v53, %v452_v59  ;;  %vm548_vm3 = vcmp.eq.f32.partialorder %v1363_v54, %v538_v53 }
 0x205   :  { %1952 = vst [vmem:[#allocation11_spill] sm:$0xff] %v1562_v27  ;;  %559 = vmin.xlane.f32.xlu2 %v1539_v60  ;;  %v552_v21 = vsel %vm548_vm3, %v1003_v33, 64  ;;  %v553_v11 = vsel %vm549_vm1, %v1003_v33, 64  ;;  %v760_v16 = vsel %vm756_vm2, %v1003_v33, 64 }
 0x206   :  { %1953 = vst [vmem:[#allocation6_spill] sm:$0xff] %v1567_v44  ;;  %v1575_v42 = vsel %vm14_vm0, %v552_v21, 2147483647  ;;  %v1578_v17 = vsel %vm14_vm0, %v553_v11, 2147483647  ;;  %v149_v44 = vand.u32 65535, %v1438_v8 }
 0x207   :  { %v586_v47 = vshra.s32 %v1575_v42, 16  ;;  %v601_v12 = vshra.s32 %v1578_v17, 16  ;;  %v1592_v46 = vsel %vm14_vm0, %v760_v16, 2147483647 }
 0x208   :  { %v766_v7 = vshra.s32 %v1592_v46, 16 }
 0x209   :  { %v1583_v10 = vcvt.s32.f32 %v586_v47  ;;  %v1587_v59 = vcvt.s32.f32 %v601_v12 }
 0x20a   :  { %v1589_v35 = vpop.xlane.xlu0 %747  ;;  %v1621_v6 = vcvt.s32.f32 %v766_v7 }
 0x20b   :  { %1954 = vst [vmem:[#allocation10_spill] sm:$0xff] %v1589_v35  ;;  %v1594_v56 = vpop.xlane.xlu1 %750  ;;  %v1596_v53 = vpop.xlane.xlu2 %744  ;;  %589 = vmin.xlane.f32.xlu1 %v1583_v10  ;;  %574 = vmin.xlane.f32.xlu0 %v1585_v49  ;;  %vm758_vm6 = vcmp.eq.f32.partialorder %v1375_v40, %v1589_v35 }
 0x20c   :  { %1955 = vst [vmem:[#allocation15_spill] sm:$0xff] %v1594_v56  ;;  %vm759_vm7 = vcmp.eq.f32.partialorder %v1378_v4, %v1594_v56  ;;  %vm757_vm8 = vcmp.eq.f32.partialorder %v1381_v22, %v1596_v53  ;;  %v762_v11 = vsel %vm758_vm6, %v1003_v33, 64 }
 0x20d   :  { %1956 = vst [vmem:[#allocation16_spill] sm:$0xff] %v1596_v53  ;;  %604 = vmin.xlane.f32.xlu2 %v1587_v59  ;;  %v761_v21 = vsel %vm757_vm8, %v1003_v33, 64  ;;  %v1614_v47 = vsel %vm14_vm0, %v762_v11, 2147483647  ;;  %v763_v12 = vsel %vm759_vm7, %v1003_v33, 64 }
 0x20e   :  { %v1611_v16 = vsel %vm14_vm0, %v761_v21, 2147483647  ;;  %v796_v35 = vshra.s32 %v1614_v47, 16  ;;  %v1626_v0 = vsel %vm14_vm0, %v763_v12, 2147483647 }
 0x20f   :  { %v781_v56 = vshra.s32 %v1611_v16, 16  ;;  %v811_v21 = vshra.s32 %v1626_v0, 16 }
 0x210   :  { %v1623_v53 = vcvt.s32.f32 %v796_v35 }
 0x211   :  { %v1619_v27 = vcvt.s32.f32 %v781_v56  ;;  %v1632_v11 = vcvt.s32.f32 %v811_v21  ;;  %v134_v56 = vand.u32 65535, %v1401_v9  ;;  %v151_v21 = vcvt.s32.f32 %v149_v44 }
 0x212   :  { %v345_v9 = vand.u32 65535, %v1479_v13  ;;  %v360_v13 = vand.u32 65535, %v1482_v36 }
 0x213   :  { %784 = vmin.xlane.f32.xlu1 %v1619_v27  ;;  %769 = vmin.xlane.f32.xlu0 %v1621_v6  ;;  %v136_v35 = vcvt.s32.f32 %v134_v56  ;;  %v164_v56 = vand.u32 65535, %v1434_v18 }
 0x215   :  { %799 = vmin.xlane.f32.xlu2 %v1623_v53  ;;  %v166_v44 = vcvt.s32.f32 %v164_v56 }
 0x21b   :  { %814 = vmin.xlane.f32.xlu0 %v1632_v11 }
 0x25d   :  { %v1636_v7 = vpop.xlane.xlu1 %138 }
 0x25e   :  { %vm140_vm9 = vcmp.eq.f32.partialorder %v1404_v1, %v1636_v7  ;;  %v179_v1 = vand.u32 65535, %v1451_v32 }
 0x25f   :  { %v141_v12 = vsel %vm140_vm9, %v136_v35, inf }
 0x260   :  { %142 = vmin.xlane.f32.xlu2 %v141_v12  ;;  %v347_v12 = vcvt.s32.f32 %v345_v9  ;;  %v181_v50 = vcvt.s32.f32 %v179_v1  ;;  %v362_v9 = vcvt.s32.f32 %v360_v13  ;;  %v555_v1 = vand.u32 65535, %v1530_v2 }
 0x261   :  { %v765_v13 = vand.u32 65535, %v1592_v46 }
 0x265   :  { %v1641_v26 = vpop.xlane.xlu2 %168 }
 0x266   :  { %v1643_v24 = vpop.xlane.xlu0 %153  ;;  %vm170_vm11 = vcmp.eq.f32.partialorder %v1442_v38, %v1641_v26  ;;  %v390_v38 = vand.u32 65535, %v1527_v37 }
 0x267   :  { %vm155_vm10 = vcmp.eq.f32.partialorder %v1444_v23, %v1643_v24  ;;  %v171_v23 = vsel %vm170_vm11, %v166_v44, inf }
 0x268   :  { %v156_v15 = vsel %vm155_vm10, %v151_v21, inf }
 0x269   :  { %157 = vmin.xlane.f32.xlu1 %v156_v15  ;;  %v375_v15 = vand.u32 65535, %v1497_v48 }
 0x26b   :  { %v377_v56 = vcvt.s32.f32 %v375_v15 }
 0x26e   :  { %v1652_v8 = vpop.xlane.xlu1 %349  ;;  %v1654_v35 = vpop.xlane.xlu0 %183 }
 0x26f   :  { %vm351_vm12 = vcmp.eq.f32.partialorder %v1487_v3, %v1652_v8  ;;  %vm185_vm13 = vcmp.eq.f32.partialorder %v1489_v20, %v1654_v35  ;;  %v392_v20 = vcvt.s32.f32 %v390_v38  ;;  %v600_v38 = vand.u32 65535, %v1578_v17 }
 0x270   :  { %v1656_v34 = vpop.xlane.xlu2 %364  ;;  %v352_v18 = vsel %vm351_vm12, %v347_v12, inf  ;;  %v186_v32 = vsel %vm185_vm13, %v181_v50, inf  ;;  %v570_v12 = vand.u32 65535, %v1545_v58 }
 0x271   :  { %353 = vmin.xlane.f32.xlu0 %v352_v18  ;;  %172 = vmin.xlane.f32.xlu1 %v171_v23  ;;  %vm366_vm14 = vcmp.eq.f32.partialorder %v1491_v28, %v1656_v34  ;;  %v585_v28 = vand.u32 65535, %v1575_v42  ;;  %v557_v18 = vcvt.s32.f32 %v555_v1  ;;  %v145_v1 = vcvt.f32.s32 %v1636_v7 }
 0x272   :  { %187 = vmin.xlane.f32.xlu2 %v186_v32  ;;  %v367_v48 = vsel %vm366_vm14, %v362_v9, inf  ;;  %v572_v23 = vcvt.s32.f32 %v570_v12  ;;  %v767_v9 = vcvt.s32.f32 %v765_v13  ;;  %v356_v7 = vcvt.f32.s32 %v1652_v8 }
 0x276   :  { %v1667_v21 = vpop.xlane.xlu1 %394  ;;  %v1669_v3 = vpop.xlane.xlu0 %379 }
 0x277   :  { %vm396_vm15 = vcmp.eq.f32.partialorder %v1535_v25, %v1667_v21  ;;  %vm381_vm1 = vcmp.eq.f32.partialorder %v1537_v14, %v1669_v3  ;;  %v587_v14 = vcvt.s32.f32 %v585_v28 }
 0x278   :  { %v1671_v50 = vpop.xlane.xlu2 %559  ;;  %v397_v36 = vsel %vm396_vm15, %v392_v20, inf  ;;  %v382_v37 = vsel %vm381_vm1, %v377_v56, inf  ;;  %v602_v20 = vcvt.s32.f32 %v600_v38  ;;  %v190_v38 = vcvt.f32.s32 %v1654_v35 }
 0x279   :  { %398 = vmin.xlane.f32.xlu0 %v397_v36  ;;  %368 = vmin.xlane.f32.xlu1 %v367_v48  ;;  %vm561_vm2 = vcmp.eq.f32.partialorder %v1539_v60, %v1671_v50  ;;  %v780_v60 = vand.u32 65535, %v1611_v16  ;;  %v810_v36 = vand.u32 65535, %v1626_v0  ;;  %v401_v35 = vcvt.f32.s32 %v1667_v21 }
 0x27a   :  { %383 = vmin.xlane.f32.xlu2 %v382_v37  ;;  %v562_v58 = vsel %vm561_vm2, %v557_v18, inf }
 0x27b   :  { %v782_v15 = vcvt.s32.f32 %v780_v60  ;;  %v812_v37 = vcvt.s32.f32 %v810_v36  ;;  %v175_v60 = vcvt.f32.s32 %v1641_v26 }
 0x27e   :  { %v1682_v44 = vpop.xlane.xlu1 %589  ;;  %v1684_v25 = vpop.xlane.xlu0 %574 }
 0x27f   :  { %vm591_vm3 = vcmp.eq.f32.partialorder %v1583_v10, %v1682_v44  ;;  %vm576_vm6 = vcmp.eq.f32.partialorder %v1585_v49, %v1684_v25 }
 0x280   :  { %v1690_v42 = vpop.xlane.xlu2 %604  ;;  %v592_v2 = vsel %vm591_vm3, %v587_v14, inf  ;;  %v577_v32 = vsel %vm576_vm6, %v572_v23, inf }
 0x281   :  { %593 = vmin.xlane.f32.xlu0 %v592_v2  ;;  %563 = vmin.xlane.f32.xlu1 %v562_v58  ;;  %vm606_vm7 = vcmp.eq.f32.partialorder %v1587_v59, %v1690_v42  ;;  %v795_v59 = vand.u32 65535, %v1614_v47  ;;  %v146_v47 = vshll.u32 %v145_v1, 16 }
 0x282   :  { %578 = vmin.xlane.f32.xlu2 %v577_v32  ;;  %v607_v17 = vsel %vm606_vm7, %v602_v20, inf  ;;  %v176_v20 = vshll.u32 %v175_v60, 16  ;;  %v581_v60 = vcvt.f32.s32 %v1684_v25 }
 0x286   :  { %v1697_v10 = vpop.xlane.xlu1 %784  ;;  %v1699_v49 = vpop.xlane.xlu0 %769 }
 0x287   :  { %vm786_vm8 = vcmp.eq.f32.partialorder %v1619_v27, %v1697_v10  ;;  %vm771_vm9 = vcmp.eq.f32.partialorder %v1621_v6, %v1699_v49  ;;  %v797_v27 = vcvt.s32.f32 %v795_v59  ;;  %v191_v59 = vshll.u32 %v190_v38, 16 }
 0x288   :  { %v787_v16 = vsel %vm786_vm8, %v782_v15, inf  ;;  %v772_v56 = vsel %vm771_vm9, %v767_v9, inf  ;;  %v1705_v46 = vpop.xlane.xlu2 %799  ;;  %v357_v9 = vshll.u32 %v356_v7, 16 }
 0x289   :  { %788 = vmin.xlane.f32.xlu0 %v787_v16  ;;  %608 = vmin.xlane.f32.xlu1 %v607_v17  ;;  %vm801_vm10 = vcmp.eq.f32.partialorder %v1623_v53, %v1705_v46  ;;  %v160_v53 = vcvt.f32.s32 %v1643_v24 }
 0x28a   :  { %773 = vmin.xlane.f32.xlu2 %v772_v56  ;;  %v802_v6 = vsel %vm801_vm10, %v797_v27, inf }
 0x28b   :  { %v161_v2 = vshll.u32 %v160_v53, 16 }
 0x28e   :  { %v1711_v48 = vpop.xlane.xlu0 %814 }
 0x28f   :  { %vm816_vm11 = vcmp.eq.f32.partialorder %v1632_v11, %v1711_v48 }
 0x290   :  { %v817_v28 = vsel %vm816_vm11, %v812_v37, inf  ;;  %v371_v37 = vcvt.f32.s32 %v1656_v34 }
 0x291   :  { %803 = vmin.xlane.f32.xlu1 %v802_v6 }
 0x292   :  { %818 = vmin.xlane.f32.xlu2 %v817_v28 }
 0x2d3   :  { %v143_v12 = vpop.xlane.xlu2 %142 }
 0x2d4   :  { %v144_v14 = vcvt.f32.s32 %v143_v12 }
 0x2d6   :  { %v147_v0 = vadd.s32 %v146_v47, %v144_v14 }
 0x2d8   :  { %vm193_vm12 = vcmp.eq.s32.totalorder %v1003_v33, %v147_v0  ;;  %v372_v0 = vshll.u32 %v371_v37, 16 }
 0x2d9   :  { %v197_v18 = vsel %vm193_vm12, -inf, %v1283_v5 }
 0x2da   :  { %v201_v23 = vsel %vm14_vm0, %v197_v18, -inf }
 0x2db   :  { %202 = vmax.xlane.f32.xlu0 %v201_v23 }
 0x2dc   :  { %v158_v11 = vpop.xlane.xlu1 %157 }
 0x2dd   :  { %v159_v58 = vcvt.f32.s32 %v158_v11 }
 0x2df   :  { %v162_v32 = vadd.s32 %v161_v2, %v159_v58  ;;  %v566_v58 = vcvt.f32.s32 %v1671_v50 }
 0x2e1   :  { %vm194_vm13 = vcmp.eq.s32.totalorder %v1003_v33, %v162_v32  ;;  %v596_v32 = vcvt.f32.s32 %v1682_v44 }
 0x2e2   :  { %v198_v13 = vsel %vm194_vm13, -inf, %v1302_v55  ;;  %v386_v55 = vcvt.f32.s32 %v1669_v3  ;;  %v402_v3 = vshll.u32 %v401_v35, 16 }
 0x2e3   :  { %v204_v24 = vsel %vm14_vm0, %v198_v13, -inf  ;;  %v597_v25 = vshll.u32 %v596_v32, 16 }
 0x2e4   :  { %205 = vmax.xlane.f32.xlu1 %v204_v24  ;;  %v173_v5 = vpop.xlane.xlu1 %172  ;;  %v354_v15 = vpop.xlane.xlu0 %353  ;;  %v387_v23 = vshll.u32 %v386_v55, 16 }
 0x2e5   :  { %v174_v16 = vcvt.f32.s32 %v173_v5  ;;  %v188_v17 = vpop.xlane.xlu2 %187  ;;  %v355_v56 = vcvt.f32.s32 %v354_v15 }
 0x2e6   :  { %v189_v26 = vcvt.f32.s32 %v188_v17  ;;  %v582_v17 = vshll.u32 %v581_v60, 16 }
 0x2e7   :  { %v177_v36 = vadd.s32 %v176_v20, %v174_v16  ;;  %v358_v8 = vadd.s32 %v357_v9, %v355_v56  ;;  %v567_v20 = vshll.u32 %v566_v58, 16 }
 0x2e8   :  { %v192_v27 = vadd.s32 %v191_v59, %v189_v26  ;;  %v611_v26 = vcvt.f32.s32 %v1690_v42 }
 0x2e9   :  { %vm195_vm14 = vcmp.eq.s32.totalorder %v1003_v33, %v177_v36  ;;  %vm404_vm15 = vcmp.eq.s32.totalorder %v1003_v33, %v358_v8  ;;  %v791_v36 = vcvt.f32.s32 %v1697_v10  ;;  %v776_v8 = vcvt.f32.s32 %v1699_v49 }
 0x2ea   :  { %vm196_vm1 = vcmp.eq.s32.totalorder %v1003_v33, %v192_v27  ;;  %v199_v6 = vsel %vm195_vm14, -inf, %v1297_v30  ;;  %v408_v28 = vsel %vm404_vm15, -inf, %v1321_v63  ;;  %vm213_vm15 = vcmp.eq.s32.totalorder %v1003_v33, 2 }
 0x2eb   :  { %v200_v1 = vsel %vm196_vm1, -inf, %v1293_v57  ;;  %v207_v12 = vsel %vm14_vm0, %v199_v6, -inf  ;;  %v412_v34 = vsel %vm14_vm0, %v408_v28, -inf  ;;  %v792_v49 = vshll.u32 %v791_v36, 16 }
 0x2ec   :  { %v369_v47 = vpop.xlane.xlu1 %368  ;;  %v210_v21 = vsel %vm14_vm0, %v200_v1, -inf  ;;  %208 = vmax.xlane.f32.xlu2 %v207_v12  ;;  %413 = vmax.xlane.f32.xlu1 %v412_v34  ;;  %v399_v14 = vpop.xlane.xlu0 %398  ;;  %v612_v1 = vshll.u32 %v611_v26, 16  ;;  %vm218_vm1 = vcmask 23552   ;;  %v1961_v26 = vld [vmem:[#allocation4_spill] sm:$0xff] }
 0x2ed   :  { %v370_v53 = vcvt.f32.s32 %v369_v47  ;;  %211 = vmax.xlane.f32.xlu0 %v210_v21  ;;  %v384_v18 = vpop.xlane.xlu2 %383  ;;  %v400_v30 = vcvt.f32.s32 %v399_v14  ;;  %v777_v47 = vshll.u32 %v776_v8, 16  ;;  %v1962_v8 = vld [vmem:[#allocation6_spill] sm:$0xff] }
 0x2ee   :  { %v385_v63 = vcvt.f32.s32 %v384_v18 }
 0x2ef   :  { %v373_v11 = vadd.s32 %v372_v0, %v370_v53  ;;  %v403_v57 = vadd.s32 %v402_v3, %v400_v30  ;;  %v806_v0 = vcvt.f32.s32 %v1705_v46  ;;  %v821_v3 = vcvt.f32.s32 %v1711_v48 }
 0x2f0   :  { %v388_v2 = vadd.s32 %v387_v23, %v385_v63 }
 0x2f1   :  { %vm405_vm2 = vcmp.eq.s32.totalorder %v1003_v33, %v373_v11  ;;  %vm407_vm3 = vcmp.eq.s32.totalorder %v1003_v33, %v403_v57  ;;  %v807_v57 = vshll.u32 %v806_v0, 16  ;;  %v822_v58 = vshll.u32 %v821_v3, 16  ;;  %v1969_v0 = vld [vmem:[#allocation12_spill] sm:$0xff] }
 0x2f2   :  { %vm406_vm6 = vcmp.eq.s32.totalorder %v1003_v33, %v388_v2  ;;  %v409_v7 = vsel %vm405_vm2, -inf, %v1315_v31  ;;  %v411_v38 = vsel %vm407_vm3, -inf, %v1342_v52  ;;  %v663_v3 = vsel %vm27_vm4, %v1969_v0, 0.0 }
 0x2f3   :  { %v410_v13 = vsel %vm406_vm6, -inf, %v1318_v62  ;;  %v415_v24 = vsel %vm14_vm0, %v409_v7, -inf  ;;  %v421_v50 = vsel %vm14_vm0, %v411_v38, -inf }
 0x2f4   :  { %v564_v5 = vpop.xlane.xlu1 %563  ;;  %v418_v44 = vsel %vm14_vm0, %v410_v13, -inf  ;;  %416 = vmax.xlane.f32.xlu2 %v415_v24  ;;  %422 = vmax.xlane.f32.xlu1 %v421_v50  ;;  %v594_v15 = vpop.xlane.xlu0 %593 }
 0x2f5   :  { %v565_v9 = vcvt.f32.s32 %v564_v5  ;;  %419 = vmax.xlane.f32.xlu0 %v418_v44  ;;  %v579_v16 = vpop.xlane.xlu2 %578  ;;  %v595_v31 = vcvt.f32.s32 %v594_v15 }
 0x2f6   :  { %v580_v52 = vcvt.f32.s32 %v579_v16  ;;  %v1959_v16 = vld [vmem:[#allocation3_spill] sm:$0xff] }
 0x2f7   :  { %v568_v56 = vadd.s32 %v567_v20, %v565_v9  ;;  %v598_v62 = vadd.s32 %v597_v25, %v595_v31  ;;  %v1958_v25 = vld [vmem:[#allocation5_spill] sm:$0xff] }
 0x2f8   :  { %v583_v59 = vadd.s32 %v582_v17, %v580_v52  ;;  %v1960_v52 = vld [vmem:[#allocation2_spill] sm:$0xff] }
 0x2f9   :  { %vm614_vm7 = vcmp.eq.s32.totalorder %v1003_v33, %v568_v56  ;;  %vm616_vm8 = vcmp.eq.s32.totalorder %v1003_v33, %v598_v62 }
 0x2fa   :  { %vm615_vm9 = vcmp.eq.s32.totalorder %v1003_v33, %v583_v59  ;;  %v618_v27 = vsel %vm614_vm7, -inf, %v1336_v45  ;;  %v620_v37 = vsel %vm616_vm8, -inf, %v1363_v54 }
 0x2fb   :  { %v619_v35 = vsel %vm615_vm9, -inf, %v1339_v39  ;;  %v622_v55 = vsel %vm14_vm0, %v618_v27, -inf  ;;  %v628_v42 = vsel %vm14_vm0, %v620_v37, -inf }
 0x2fc   :  { %v609_v6 = vpop.xlane.xlu1 %608  ;;  %v625_v10 = vsel %vm14_vm0, %v619_v35, -inf  ;;  %623 = vmax.xlane.f32.xlu2 %v622_v55  ;;  %629 = vmax.xlane.f32.xlu1 %v628_v42  ;;  %v789_v28 = vpop.xlane.xlu0 %788  ;;  %v1963_v35 = vld [vmem:[#allocation8_spill] sm:$0xff]  ;;  %v1964_v42 = vld [vmem:[#allocation9_spill] sm:$0xff] }
 0x2fd   :  { %v610_v12 = vcvt.f32.s32 %v609_v6  ;;  %626 = vmax.xlane.f32.xlu0 %v625_v10  ;;  %v774_v34 = vpop.xlane.xlu2 %773  ;;  %v790_v45 = vcvt.f32.s32 %v789_v28  ;;  %v661_v6 = vsel %vm27_vm4, %v1964_v42, 0.0  ;;  %v1965_v10 = vld [vmem:[#allocation16_spill] sm:$0xff] }
 0x2fe   :  { %v775_v54 = vcvt.f32.s32 %v774_v34  ;;  %v753_v28 = vsel %vm120_vm5, %v1965_v10, %v661_v6 }
 0x2ff   :  { %v613_v21 = vadd.s32 %v612_v1, %v610_v12  ;;  %v793_v39 = vadd.s32 %v792_v49, %v790_v45  ;;  %v1966_v12 = vld [vmem:[#allocation7_spill] sm:$0xff] }
 0x300   :  { %v778_v14 = vadd.s32 %v777_v47, %v775_v54  ;;  %v1967_v54 = vld [vmem:[#allocation11_spill] sm:$0xff] }
 0x301   :  { %vm617_vm10 = vcmp.eq.s32.totalorder %v1003_v33, %v613_v21  ;;  %vm825_vm11 = vcmp.eq.s32.totalorder %v1003_v33, %v793_v39  ;;  %v1968_v39 = vld [vmem:[#allocation13_spill] sm:$0xff] }
 0x302   :  { %vm824_vm12 = vcmp.eq.s32.totalorder %v1003_v33, %v778_v14  ;;  %v621_v53 = vsel %vm617_vm10, -inf, %v1357_v51  ;;  %v829_v18 = vsel %vm825_vm11, -inf, %v1381_v22  ;;  %v662_v14 = vsel %vm27_vm4, %v1968_v39, 0.0 }
 0x303   :  { %v828_v30 = vsel %vm824_vm12, -inf, %v1360_v61  ;;  %v631_v23 = vsel %vm14_vm0, %v621_v53, -inf  ;;  %v835_v63 = vsel %vm14_vm0, %v829_v18, -inf  ;;  %v1970_v53 = vld [vmem:[#allocation10_spill] sm:$0xff] }
 0x304   :  { %v804_v11 = vpop.xlane.xlu1 %803  ;;  %v832_v46 = vsel %vm14_vm0, %v828_v30, -inf  ;;  %632 = vmax.xlane.f32.xlu2 %v631_v23  ;;  %836 = vmax.xlane.f32.xlu1 %v835_v63  ;;  %v754_v18 = vsel %vm120_vm5, %v1970_v53, %v662_v14  ;;  %v1971_v23 = vld [vmem:[#allocation15_spill] sm:$0xff] }
 0x305   :  { %v805_v2 = vcvt.f32.s32 %v804_v11  ;;  %833 = vmax.xlane.f32.xlu0 %v832_v46  ;;  %v819_v48 = vpop.xlane.xlu2 %818  ;;  %v755_v63 = vsel %vm120_vm5, %v1971_v23, %v663_v3 }
 0x306   :  { %v820_v32 = vcvt.f32.s32 %v819_v48 }
 0x307   :  { %v808_v51 = vadd.s32 %v807_v57, %v805_v2 }
 0x308   :  { %v823_v60 = vadd.s32 %v822_v58, %v820_v32 }
 0x309   :  { %vm826_vm13 = vcmp.eq.s32.totalorder %v1003_v33, %v808_v51 }
 0x30a   :  { %v830_v61 = vsel %vm826_vm13, -inf, %v1375_v40  ;;  %vm827_vm14 = vcmp.eq.s32.totalorder %v1003_v33, %v823_v60 }
 0x30b   :  { %v838_v22 = vsel %vm14_vm0, %v830_v61, -inf  ;;  %v831_v7 = vsel %vm827_vm14, -inf, %v1378_v4 }
 0x30c   :  { %839 = vmax.xlane.f32.xlu2 %v838_v22  ;;  %v841_v38 = vsel %vm14_vm0, %v831_v7, -inf }
 0x30d   :  { %842 = vmax.xlane.f32.xlu0 %v841_v38 }
 0x34e   :  { %v203_v13 = vpop.xlane.xlu0 %202 }
 0x34f   :  { %v214_v24 = vsel %vm213_vm15, %v203_v13, %v1396_v29 }
 0x350   :  { %219 = vst.msk [vmem:[%s1908_s1] sm:$0xff] %vm218_vm1, %v214_v24 }
 0x357   :  { %v206_v40 = vpop.xlane.xlu1 %205 }
 0x358   :  { %v215_v4 = vsel %vm213_vm15, %v206_v40, %v1427_v43  ;;  %v1957_v43 = vld [vmem:[#allocation14_spill] sm:$0xff] }
 0x359   :  { %220 = vst.msk [vmem:[%s1908_s1 + $0x8] sm:$0xff] %vm218_vm1, %v215_v4 }
 0x35f   :  { %v209_v50 = vpop.xlane.xlu2 %208  ;;  %v414_v5 = vpop.xlane.xlu1 %413 }
 0x360   :  { %v216_v29 = vsel %vm213_vm15, %v209_v50, %v1418_v19  ;;  %v424_v44 = vsel %vm213_vm15, %v414_v5, %v1472_v41  ;;  %v212_v15 = vpop.xlane.xlu0 %211 }
 0x361   :  { %221 = vst.msk [vmem:[%s1908_s1 + $0x10] sm:$0xff] %vm218_vm1, %v216_v29  ;;  %v217_v20 = vsel %vm213_vm15, %v212_v15, %v1957_v43 }
 0x362   :  { %861 = vst.msk [vmem:[%s1908_s1 + $0x20] sm:$0xff] %vm218_vm1, %v424_v44 }
 0x363   :  { %222 = vst.msk [vmem:[%s1908_s1 + $0x18] sm:$0xff] %vm218_vm1, %v217_v20 }
 0x367   :  { %v417_v19 = vpop.xlane.xlu2 %416  ;;  %v423_v41 = vpop.xlane.xlu1 %422 }
 0x368   :  { %v425_v9 = vsel %vm213_vm15, %v417_v19, %v1958_v25  ;;  %v427_v31 = vsel %vm213_vm15, %v423_v41, %v1959_v16  ;;  %v420_v17 = vpop.xlane.xlu0 %419 }
 0x369   :  { %862 = vst.msk [vmem:[%s1908_s1 + $0x28] sm:$0xff] %vm218_vm1, %v425_v9  ;;  %v426_v56 = vsel %vm213_vm15, %v420_v17, %v1960_v52 }
 0x36a   :  { %864 = vst.msk [vmem:[%s1908_s1 + $0x38] sm:$0xff] %vm218_vm1, %v427_v31 }
 0x36b   :  { %863 = vst.msk [vmem:[%s1908_s1 + $0x30] sm:$0xff] %vm218_vm1, %v426_v56 }
 0x36f   :  { %v624_v62 = vpop.xlane.xlu2 %623  ;;  %v630_v59 = vpop.xlane.xlu1 %629 }
 0x370   :  { %v634_v36 = vsel %vm213_vm15, %v624_v62, %v1961_v26  ;;  %v636_v27 = vsel %vm213_vm15, %v630_v59, %v1962_v8  ;;  %v627_v37 = vpop.xlane.xlu0 %626 }
 0x371   :  { %869 = vst.msk [vmem:[%s1908_s1 + $0x40] sm:$0xff] %vm218_vm1, %v634_v36  ;;  %v635_v55 = vsel %vm213_vm15, %v627_v37, %v1963_v35 }
 0x372   :  { %871 = vst.msk [vmem:[%s1908_s1 + $0x50] sm:$0xff] %vm218_vm1, %v636_v27 }
 0x373   :  { %870 = vst.msk [vmem:[%s1908_s1 + $0x48] sm:$0xff] %vm218_vm1, %v635_v55 }
 0x377   :  { %v633_v1 = vpop.xlane.xlu2 %632  ;;  %v837_v49 = vpop.xlane.xlu1 %836 }
 0x378   :  { %v637_v34 = vsel %vm213_vm15, %v633_v1, %v1966_v12  ;;  %v845_v45 = vsel %vm213_vm15, %v837_v49, %v753_v28  ;;  %v834_v47 = vpop.xlane.xlu0 %833 }
 0x379   :  { %872 = vst.msk [vmem:[%s1908_s1 + $0x58] sm:$0xff] %vm218_vm1, %v637_v34  ;;  %v844_v21 = vsel %vm213_vm15, %v834_v47, %v1967_v54 }
 0x37a   :  { %878 = vst.msk [vmem:[%s1908_s1 + $0x68] sm:$0xff] %vm218_vm1, %v845_v45 }
 0x37b   :  { %877 = vst.msk [vmem:[%s1908_s1 + $0x60] sm:$0xff] %vm218_vm1, %v844_v21 }
 0x37f   :  { %v840_v30 = vpop.xlane.xlu2 %839 }
 0x380   :  { %v846_v11 = vsel %vm213_vm15, %v840_v30, %v754_v18  ;;  %v843_v46 = vpop.xlane.xlu0 %842 }
 0x381   :  { %879 = vst.msk [vmem:[%s1908_s1 + $0x70] sm:$0xff] %vm218_vm1, %v846_v11  ;;  %v847_v57 = vsel %vm213_vm15, %v843_v46, %v755_v63 }
 0x382   :  { %880 = vst.msk [vmem:[%s1908_s1 + $0x78] sm:$0xff] %vm218_vm1, %v847_v57 }

</bundles_post_ra>
